<compile_context>
chip_gen: v7x
topology: tpu7x:2x2x1
jax: 0.10.0
libtpu: 0.0.40
codegen_flags: <defaults>
</compile_context>

<pallas_src>
import functools

import numpy as np
import jax
import jax.numpy as jnp
from jax.experimental import pallas as pl
from jax.experimental.pallas import tpu as pltpu


def _round_up(x, m):
    return (x + m - 1) // m * m


def _postorder_internal(idx, depth):
    if idx > 2 ** depth - 1:
        return []
    return (_postorder_internal(2 * idx, depth)
            + _postorder_internal(2 * idx + 1, depth) + [idx])


# --------------------------------------------------------------------------- #
# Kernel
# --------------------------------------------------------------------------- #
def fff_kernel(x_ref, w1_ref, b1_ref, w2n_ref, b2n_ref, cm_ref, lc_ref,
               w2l_ref, out_ref, c_ref, *, node_pad):
    f32, bf16 = jnp.float32, jnp.bfloat16

    x = x_ref[...]                                               # [TB, D] bf16

    # ---- fused first layer: every node hidden unit, leaf hidden unit and
    # leaf bias-carrier (constant-1) column in a single MXU pass.
    h = jnp.dot(x, w1_ref[...], preferred_element_type=f32) + b1_ref[...]
    h = jnp.maximum(h, 0.0)                                      # [TB, node_pad + leaf_pad]

    # ---- node second layer on the MXU.  w2n is pre-packed so that
    # w2n[h*N + j, j] = wb_j[h]; the output is already c_pad lanes wide, so the
    # logit / activation stores are unmasked lane-dense vsts (no in-kernel pad).
    logit = (jnp.dot(h[:, :node_pad].astype(bf16), w2n_ref[...],
                     preferred_element_type=f32) + b2n_ref[...])  # [TB, c_pad]

    # hard routing straight from the logit sign (sigmoid(z) >= 0.5 <=> z >= 0);
    # the exact sigmoid is evaluated only for the returned activations.
    hc = (logit >= 0.0).astype(bf16)                             # [TB, c_pad] in {0,1}
    c_ref[...] = (1.0 / (1.0 + jnp.exp(-logit))).astype(c_ref.dtype)

    # ---- leaf gates, pre-expanded host-side to every leaf hidden unit and
    # bias carrier.  cm is the tiled (rmask - lmask) mask: viol[b, col] == 0
    # iff the leaf owning column `col` lies on row b's routed path.
    viol = jnp.dot(hc, cm_ref[...], preferred_element_type=f32) + lc_ref[...]
    g = (viol < 0.5).astype(f32)                                 # [TB, leaf_pad]

    # ---- gated leaf combine: ONE dense matmul.  The bias-carrier columns of h
    # are exactly 1 after ReLU, so gating them selects the leaf bias rows of w2l.
    h_leaf = h[:, node_pad:]                                     # lane-aligned suffix slice
    out = jnp.dot((g * h_leaf).astype(bf16), w2l_ref[...],
                  preferred_element_type=f32)
    out_ref[...] = out.astype(out_ref.dtype)


# --------------------------------------------------------------------------- #
# Wrapper
# --------------------------------------------------------------------------- #
def fff_layer_forward(x, arrays, dims, *, batch_tile=None, out_dtype=jnp.float32):
    """Eval-mode FFFLayer.forward: returns (out [B, out_dim], activations).

    out_dtype=jnp.bfloat16 halves the output HBM write traffic / VMEM double
    buffer if downstream tolerates it; default keeps f32 parity.
    """
    w1, b1, w2n, b2n, cm, lc, w2l = arrays
    depth = dims["depth"]
    n_nodes = dims["n_nodes"]
    o = dims["out_dim"]
    node_pad, o_pad, c_pad = dims["node_pad"], dims["out_pad"], dims["c_pad"]

    b, d = x.shape

    # ---- per-chip knobs: VMEM capacity drives both the scoped limit and the
    # default batch tile (v5e/v6e: 128 MiB physical; v7x: 64 MiB per TensorCore,
    # and with the "parallel" batch axis each core holds its own weight copy).
    try:
        vmem_cap = int(pltpu.get_tpu_info().vmem_capacity_bytes)
    except Exception:
        vmem_cap = 128 * 1024 * 1024
    if batch_tile is None:
        # 256 rows keeps v6e's 256-wide MXU full and halves grid-step overhead;
        # v7x (64 MiB/TC) stays at 128 to leave room for the resident weights.
        batch_tile = 256 if vmem_cap >= 96 * 1024 * 1024 else 128
    vmem_limit = min(100 * 1024 * 1024, (vmem_cap * 3) // 4)

    # bf16 packs 16 rows per vreg sublane group -> 16-row-aligned batch tiles.
    tb = min(_round_up(batch_tile, 16), _round_up(b, 16))
    bp = _round_up(b, tb)
    xb = x.astype(jnp.bfloat16)
    if bp != b:
        xb = jnp.concatenate([xb, jnp.zeros((bp - b, d), jnp.bfloat16)], axis=0)

    kernel = functools.partial(fff_kernel, node_pad=node_pad)
    batch_map = lambda i: (i, 0)     # blocked (double-buffered) over batch

    def call(resident_weights):
        if resident_weights:
            # Whole-array, single-buffered VMEM residency: weights are DMA'd
            # once and are NOT double-buffered per grid step.
            def wspec(shape):
                return pl.BlockSpec(memory_space=pltpu.MemorySpace.VMEM)
        else:
            # Fallback: blocked spec with a constant index_map (2 VMEM buffers,
            # known-good path).
            def wspec(shape):
                return pl.BlockSpec(shape, lambda i: (0, 0))

        fn = pl.pallas_call(
            kernel,
            grid=(bp // tb,),
            in_specs=[
                pl.BlockSpec((tb, d), batch_map),   # x (bf16), pipelined over batch
                wspec(w1.shape),                    # fused W1 + bias carriers (bf16)
                wspec(b1.shape),                    # fused b1 (f32)
                wspec(w2n.shape),                   # node W2 packed [node_pad, c_pad] (bf16)
                wspec(b2n.shape),                   # node b2 padded to c_pad (f32)
                wspec(cm.shape),                    # tiled (rmask - lmask) (bf16)
                wspec(lc.shape),                    # tiled left-turn counts (f32)
                wspec(w2l.shape),                   # leaf W2 + bias rows (bf16)
            ],
            out_specs=(pl.BlockSpec((tb, o_pad), batch_map),
                       pl.BlockSpec((tb, c_pad), batch_map)),
            out_shape=(jax.ShapeDtypeStruct((bp, o_pad), out_dtype),
                       jax.ShapeDtypeStruct((bp, c_pad), jnp.float32)),
            compiler_params=pltpu.CompilerParams(
                # batch axis is embarrassingly parallel -> both v7x TensorCores.
                dimension_semantics=("parallel",),
                vmem_limit_bytes=vmem_limit),
        )
        return jax.block_until_ready(fn(xb, w1, b1, w2n, b2n, cm, lc, w2l))

    try:
        out_p, c_p = call(True)
    except Exception:
        out_p, c_p = call(False)

    out = out_p[:b, :o].astype(jnp.float32)
    c = c_p[:b, :n_nodes]
    activations = [c[:, i - 1:i] for i in _postorder_internal(1, depth)]
    return out, activations


# --------------------------------------------------------------------------- #
# Parameter init / packing
# --------------------------------------------------------------------------- #
def init_params(key, depth, in_dim, node_hidden, leaf_hidden, out_dim):
    """Per-MLP parameters with nn.Linear-style init, as numpy arrays."""
    n_nodes, n_leaves = 2 ** depth - 1, 2 ** depth

    def linear(k, fan_in, fan_out):
        kw, kb = jax.random.split(k)
        bound = 1.0 / np.sqrt(fan_in)
        w = jax.random.uniform(kw, (fan_out, fan_in), jnp.float32, -bound, bound)
        bb = jax.random.uniform(kb, (fan_out,), jnp.float32, -bound, bound)
        return np.asarray(w), np.asarray(bb)

    keys = jax.random.split(key, n_nodes + n_leaves)
    nodes, leaves = [], []
    for j in range(n_nodes):
        k1, k2 = jax.random.split(keys[j])
        nodes.append((*linear(k1, in_dim, node_hidden), *linear(k2, node_hidden, 1)))
    for l in range(n_leaves):
        k1, k2 = jax.random.split(keys[n_nodes + l])
        leaves.append((*linear(k1, in_dim, leaf_hidden),
                       *linear(k2, leaf_hidden, out_dim)))
    return nodes, leaves


def pack_params(nodes, leaves, depth, in_dim, node_hidden, leaf_hidden, out_dim):
    n_nodes, n_leaves = 2 ** depth - 1, 2 ** depth
    d, hn, hl, o = in_dim, node_hidden, leaf_hidden, out_dim
    node_w = n_nodes * hn
    node_pad = _round_up(node_w, 128)        # leaf section starts lane-aligned
    leaf_w = n_leaves * hl
    leaf_tot = leaf_w + n_leaves             # + leaf bias-carrier columns
    leaf_pad = _round_up(leaf_tot, 128)
    wtot = node_pad + leaf_pad
    o_pad = _round_up(o, 128)                # lane-dense output stores
    c_pad = _round_up(n_nodes, 128)          # lane-dense logit / activation stores

    w1 = np.zeros((d, wtot), np.float32)
    b1 = np.zeros((1, wtot), np.float32)
    # node second layer as a sparse block matrix -> MXU matmul in the kernel.
    w2n = np.zeros((node_pad, c_pad), np.float32)
    b2n = np.zeros((1, c_pad), np.float32)
    for j, (wa, ba, wb, bb) in enumerate(nodes):       # wa [hn,d], wb [1,hn]
        for h in range(hn):
            col = h * n_nodes + j                      # h-major, node-minor
            w1[:, col] = wa[h]
            b1[0, col] = ba[h]
            w2n[col, j] = wb[0, h]
        b2n[0, j] = bb[0]

    w2l = np.zeros((leaf_pad, o_pad), np.float32)
    for k, (wa, ba, wb, bb) in enumerate(leaves):      # wa [hl,d], wb [o,hl]
        for h in range(hl):
            col = h * n_leaves + k                     # h-major, leaf-minor
            w1[:, node_pad + col] = wa[h]
            b1[0, node_pad + col] = ba[h]
            w2l[col, :o] = wb[:, h]
        # Leaf bias carrier: zero weights + bias 1 -> ReLU output exactly 1;
        # gated by the leaf selector and matched to the bias row of w2l.
        b1[0, node_pad + leaf_w + k] = 1.0
        w2l[leaf_w + k, :o] = bb

    # path masks: leaf k turns left (bit 0) / right (bit 1) at each node on its
    # root-to-leaf path; it is selected iff it accumulates zero violations.
    lmask = np.zeros((n_nodes, n_leaves), np.float32)
    rmask = np.zeros((n_nodes, n_leaves), np.float32)
    for k in range(n_leaves):
        node = 1
        for t in range(depth):
            bit = (k >> (depth - 1 - t)) & 1
            (lmask if bit == 0 else rmask)[node - 1, k] = 1.0
            node = 2 * node + bit
    cm = rmask - lmask                         # folded mask (one matmul)
    lc = lmask.sum(axis=0)                     # left-turn counts per leaf, [L]

    # Pre-tile the gate mask to every leaf hidden unit + bias carrier so the
    # kernel never materializes a gate-expansion concat: chunk h of n_leaves
    # columns (h = 0..hl-1 hidden units, h = hl bias carriers) reuses cm / lc.
    cm_exp = np.zeros((c_pad, leaf_pad), np.float32)
    lc_exp = np.zeros((1, leaf_pad), np.float32)
    for h in range(hl + 1):
        cm_exp[:n_nodes, h * n_leaves:(h + 1) * n_leaves] = cm
        lc_exp[0, h * n_leaves:(h + 1) * n_leaves] = lc

    arrays = (jnp.asarray(w1, jnp.bfloat16), jnp.asarray(b1, jnp.float32),
              jnp.asarray(w2n, jnp.bfloat16), jnp.asarray(b2n, jnp.float32),
              jnp.asarray(cm_exp, jnp.bfloat16), jnp.asarray(lc_exp, jnp.float32),
              jnp.asarray(w2l, jnp.bfloat16))
    dims = dict(depth=depth, in_dim=d, n_nodes=n_nodes, n_leaves=n_leaves,
                node_hidden=hn, leaf_hidden=hl, out_dim=o,
                node_pad=node_pad, leaf_pad=leaf_pad, out_pad=o_pad, c_pad=c_pad)
    return arrays, dims


# --------------------------------------------------------------------------- #
# Pure-JAX reference (eval-mode FFFLayer.forward, same bf16 quantization)
# --------------------------------------------------------------------------- #
def _bf16(a):
    return jnp.asarray(a, jnp.bfloat16).astype(jnp.float32)


def reference_forward(x, nodes, leaves, depth):
    f32 = jnp.float32
    n_nodes = 2 ** depth - 1
    xq = _bf16(x)

    def node_logit(wa, ba, wb, bb):
        h = jnp.maximum(xq @ _bf16(wa).T + ba, 0.0)
        # kernel feeds bf16 h / bf16 w2 into the MXU with f32 accumulation
        return (_bf16(h) * _bf16(wb)).sum(axis=-1, keepdims=True) + bb

    def leaf_out(wa, ba, wb, bb):
        h = jnp.maximum(xq @ _bf16(wa).T + ba, 0.0)
        h = _bf16(h)                                            # kernel casts to bf16
        return h @ _bf16(wb).T + _bf16(bb)

    def rec(idx):
        if idx <= n_nodes:
            z = node_logit(*nodes[idx - 1])
            left, right = rec(2 * idx), rec(2 * idx + 1)
            hard = (z >= 0.0).astype(f32)                       # == (sigmoid(z) >= 0.5)
            return hard * left + (1.0 - hard) * right
        return leaf_out(*leaves[idx - 1 - n_nodes])

    return rec(1)


def reference_activations(x, nodes, depth):
    xq = _bf16(x)
    cs = []
    for wa, ba, wb, bb in nodes:
        h = jnp.maximum(xq @ _bf16(wa).T + ba, 0.0)
        z = (_bf16(h) * _bf16(wb)).sum(axis=-1, keepdims=True) + bb
        cs.append(jax.nn.sigmoid(z))
    return [cs[i - 1] for i in _postorder_internal(1, depth)]


# --------------------------------------------------------------------------- #
if __name__ == "__main__":
    depth, in_dim, node_hidden, leaf_hidden, out_dim, batch = 2, 32, 16, 32, 16, 8

    key = jax.random.PRNGKey(0)
    kx, kp = jax.random.split(key)
    x = jax.random.normal(kx, (batch, in_dim), jnp.float32)

    nodes, leaves = init_params(kp, depth, in_dim, node_hidden, leaf_hidden, out_dim)
    arrays, dims = pack_params(nodes, leaves, depth, in_dim, node_hidden,
                               leaf_hidden, out_dim)

    out, activations = fff_layer_forward(x, arrays, dims)
    out = jax.block_until_ready(out)

    ref_out = reference_forward(x, nodes, leaves, depth)
    np.testing.assert_allclose(np.asarray(out), np.asarray(ref_out),
                               rtol=1e-2, atol=1e-2)

    ref_acts = reference_activations(x, nodes, depth)
    assert len(activations) == 2 ** depth - 1
    for a, r in zip(activations, ref_acts):
        assert a.shape == (batch, 1)
        np.testing.assert_allclose(np.asarray(a), np.asarray(r),
                                   rtol=2e-2, atol=2e-2)

    print("KERNEL_OK")
</pallas_src>

<mosaic_0001>
module attributes {stable_mosaic.version = 11 : i64} {
  func.func @fff_kernel(%arg0: i32, %arg1: memref<16x32xbf16, #tpu.memory_space<vmem>>, %arg2: memref<32x384xbf16, #tpu.memory_space<vmem>>, %arg3: memref<1x384xf32, #tpu.memory_space<vmem>>, %arg4: memref<128x128xbf16, #tpu.memory_space<vmem>>, %arg5: memref<1x128xf32, #tpu.memory_space<vmem>>, %arg6: memref<128x256xbf16, #tpu.memory_space<vmem>>, %arg7: memref<1x256xf32, #tpu.memory_space<vmem>>, %arg8: memref<256x128xbf16, #tpu.memory_space<vmem>>, %arg9: memref<16x128xf32, #tpu.memory_space<vmem>>, %arg10: memref<16x128xf32, #tpu.memory_space<vmem>>) attributes {dimension_semantics = [#tpu.dimension_semantics<parallel>], iteration_bounds = array<i64: 1>, scalar_prefetch = 0 : i64, scratch_operands = 0 : i64, tpu.core_type = #tpu.core_type<tc>, window_params = [{transform_indices = @transform_0, window_bounds = array<i64: 16, 32>}, {pipeline_mode = #tpu.pipeline_mode<synchronous>, transform_indices = @transform_1, window_bounds = array<i64: 32, 384>}, {pipeline_mode = #tpu.pipeline_mode<synchronous>, transform_indices = @transform_2, window_bounds = array<i64: 1, 384>}, {pipeline_mode = #tpu.pipeline_mode<synchronous>, transform_indices = @transform_3, window_bounds = array<i64: 128, 128>}, {pipeline_mode = #tpu.pipeline_mode<synchronous>, transform_indices = @transform_4, window_bounds = array<i64: 1, 128>}, {pipeline_mode = #tpu.pipeline_mode<synchronous>, transform_indices = @transform_5, window_bounds = array<i64: 128, 256>}, {pipeline_mode = #tpu.pipeline_mode<synchronous>, transform_indices = @transform_6, window_bounds = array<i64: 1, 256>}, {pipeline_mode = #tpu.pipeline_mode<synchronous>, transform_indices = @transform_7, window_bounds = array<i64: 256, 128>}, {transform_indices = @transform_8, window_bounds = array<i64: 16, 128>}, {transform_indices = @transform_9, window_bounds = array<i64: 16, 128>}]} {
    %c0 = arith.constant 0 : index
    %c0_0 = arith.constant 0 : index
    %0 = vector.load %arg1[%c0, %c0_0] : memref<16x32xbf16, #tpu.memory_space<vmem>>, vector<16x32xbf16>
    %c0_1 = arith.constant 0 : index
    %c0_2 = arith.constant 0 : index
    %1 = vector.load %arg2[%c0_1, %c0_2] : memref<32x384xbf16, #tpu.memory_space<vmem>>, vector<32x384xbf16>
    %cst = arith.constant dense<0.000000e+00> : vector<16x384xf32>
    %2 = tpu.matmul %0, %1, %cst {dimension_numbers = #tpu.dot_dimension_numbers<[1], [0], [0], [1], [0, 0, 1, 1], [], []>} : vector<16x32xbf16>, vector<32x384xbf16>, vector<16x384xf32> -> vector<16x384xf32>
    %c0_3 = arith.constant 0 : index
    %c0_4 = arith.constant 0 : index
    %3 = vector.load %arg3[%c0_3, %c0_4] : memref<1x384xf32, #tpu.memory_space<vmem>>, vector<1x384xf32>
    %4 = vector.broadcast %3 : vector<1x384xf32> to vector<16x384xf32>
    %5 = arith.addf %2, %4 : vector<16x384xf32>
    %cst_5 = arith.constant 0.000000e+00 : f32
    %6 = vector.broadcast %cst_5 : f32 to vector<16x384xf32>
    %7 = arith.maximumf %5, %6 : vector<16x384xf32>
    %8 = vector.extract_strided_slice %7 {offsets = [0, 0], sizes = [16, 128], strides = [1, 1]} : vector<16x384xf32> to vector<16x128xf32>
    %9 = arith.truncf %8 : vector<16x128xf32> to vector<16x128xbf16>
    %c0_6 = arith.constant 0 : index
    %c0_7 = arith.constant 0 : index
    %10 = vector.load %arg4[%c0_6, %c0_7] : memref<128x128xbf16, #tpu.memory_space<vmem>>, vector<128x128xbf16>
    %cst_8 = arith.constant dense<0.000000e+00> : vector<16x128xf32>
    %11 = tpu.matmul %9, %10, %cst_8 {dimension_numbers = #tpu.dot_dimension_numbers<[1], [0], [0], [1], [0, 0, 1, 1], [], []>} : vector<16x128xbf16>, vector<128x128xbf16>, vector<16x128xf32> -> vector<16x128xf32>
    %c0_9 = arith.constant 0 : index
    %c0_10 = arith.constant 0 : index
    %12 = vector.load %arg5[%c0_9, %c0_10] : memref<1x128xf32, #tpu.memory_space<vmem>>, vector<1x128xf32>
    %13 = vector.broadcast %12 : vector<1x128xf32> to vector<16x128xf32>
    %14 = arith.addf %11, %13 : vector<16x128xf32>
    %cst_11 = arith.constant 0.000000e+00 : f32
    %15 = vector.broadcast %cst_11 : f32 to vector<16x128xf32>
    %16 = arith.cmpf oge, %14, %15 : vector<16x128xf32>
    %17 = arith.extui %16 : vector<16x128xi1> to vector<16x128xi32>
    %18 = arith.sitofp %17 : vector<16x128xi32> to vector<16x128xf32>
    %19 = arith.truncf %18 : vector<16x128xf32> to vector<16x128xbf16>
    %cst_12 = arith.constant 0.000000e+00 : f32
    %20 = vector.broadcast %cst_12 : f32 to vector<16x128xf32>
    %21 = arith.subf %20, %14 : vector<16x128xf32>
    %22 = math.exp %21 : vector<16x128xf32>
    %cst_13 = arith.constant 1.000000e+00 : f32
    %23 = vector.broadcast %cst_13 : f32 to vector<16x128xf32>
    %24 = arith.addf %23, %22 : vector<16x128xf32>
    %cst_14 = arith.constant 1.000000e+00 : f32
    %25 = vector.broadcast %cst_14 : f32 to vector<16x128xf32>
    %26 = arith.divf %25, %24 : vector<16x128xf32>
    %c0_15 = arith.constant 0 : index
    %c0_16 = arith.constant 0 : index
    %27 = vector.load %arg10[%c0_15, %c0_16] : memref<16x128xf32, #tpu.memory_space<vmem>>, vector<16x128xf32>
    tpu.vector_store %arg10[%c0_15, %c0_16], %26 {strides = array<i32>} : memref<16x128xf32, #tpu.memory_space<vmem>>, vector<16x128xf32>,
    %c0_17 = arith.constant 0 : index
    %c0_18 = arith.constant 0 : index
    %28 = vector.load %arg6[%c0_17, %c0_18] : memref<128x256xbf16, #tpu.memory_space<vmem>>, vector<128x256xbf16>
    %cst_19 = arith.constant dense<0.000000e+00> : vector<16x256xf32>
    %29 = tpu.matmul %19, %28, %cst_19 {dimension_numbers = #tpu.dot_dimension_numbers<[1], [0], [0], [1], [0, 0, 1, 1], [], []>} : vector<16x128xbf16>, vector<128x256xbf16>, vector<16x256xf32> -> vector<16x256xf32>
    %c0_20 = arith.constant 0 : index
    %c0_21 = arith.constant 0 : index
    %30 = vector.load %arg7[%c0_20, %c0_21] : memref<1x256xf32, #tpu.memory_space<vmem>>, vector<1x256xf32>
    %31 = vector.broadcast %30 : vector<1x256xf32> to vector<16x256xf32>
    %32 = arith.addf %29, %31 : vector<16x256xf32>
    %cst_22 = arith.constant 5.000000e-01 : f32
    %33 = vector.broadcast %cst_22 : f32 to vector<16x256xf32>
    %34 = arith.cmpf olt, %32, %33 : vector<16x256xf32>
    %35 = arith.extui %34 : vector<16x256xi1> to vector<16x256xi32>
    %36 = arith.sitofp %35 : vector<16x256xi32> to vector<16x256xf32>
    %37 = vector.extract_strided_slice %7 {offsets = [0, 128], sizes = [16, 256], strides = [1, 1]} : vector<16x384xf32> to vector<16x256xf32>
    %38 = arith.mulf %36, %37 : vector<16x256xf32>
    %39 = arith.truncf %38 : vector<16x256xf32> to vector<16x256xbf16>
    %c0_23 = arith.constant 0 : index
    %c0_24 = arith.constant 0 : index
    %40 = vector.load %arg8[%c0_23, %c0_24] : memref<256x128xbf16, #tpu.memory_space<vmem>>, vector<256x128xbf16>
    %cst_25 = arith.constant dense<0.000000e+00> : vector<16x128xf32>
    %41 = tpu.matmul %39, %40, %cst_25 {dimension_numbers = #tpu.dot_dimension_numbers<[1], [0], [0], [1], [0, 0, 1, 1], [], []>} : vector<16x256xbf16>, vector<256x128xbf16>, vector<16x128xf32> -> vector<16x128xf32>
    %c0_26 = arith.constant 0 : index
    %c0_27 = arith.constant 0 : index
    %42 = vector.load %arg9[%c0_26, %c0_27] : memref<16x128xf32, #tpu.memory_space<vmem>>, vector<16x128xf32>
    tpu.vector_store %arg9[%c0_26, %c0_27], %41 {strides = array<i32>} : memref<16x128xf32, #tpu.memory_space<vmem>>, vector<16x128xf32>,
    return
  }
  func.func @transform_0(%arg0: i32) -> (i32, i32) {
    %c0_i32 = arith.constant 0 : i32
    %c0_i32_0 = arith.constant 0 : i32
    return %arg0, %c0_i32 : i32, i32
  }
  func.func @transform_1(%arg0: i32) -> (i32, i32) {
    %c0_i32 = arith.constant 0 : i32
    %c0_i32_0 = arith.constant 0 : i32
    %c0_i32_1 = arith.constant 0 : i32
    return %c0_i32, %c0_i32_0 : i32, i32
  }
  func.func @transform_2(%arg0: i32) -> (i32, i32) {
    %c0_i32 = arith.constant 0 : i32
    %c0_i32_0 = arith.constant 0 : i32
    %c0_i32_1 = arith.constant 0 : i32
    return %c0_i32, %c0_i32_0 : i32, i32
  }
  func.func @transform_3(%arg0: i32) -> (i32, i32) {
    %c0_i32 = arith.constant 0 : i32
    %c0_i32_0 = arith.constant 0 : i32
    %c0_i32_1 = arith.constant 0 : i32
    return %c0_i32, %c0_i32_0 : i32, i32
  }
  func.func @transform_4(%arg0: i32) -> (i32, i32) {
    %c0_i32 = arith.constant 0 : i32
    %c0_i32_0 = arith.constant 0 : i32
    %c0_i32_1 = arith.constant 0 : i32
    return %c0_i32, %c0_i32_0 : i32, i32
  }
  func.func @transform_5(%arg0: i32) -> (i32, i32) {
    %c0_i32 = arith.constant 0 : i32
    %c0_i32_0 = arith.constant 0 : i32
    %c0_i32_1 = arith.constant 0 : i32
    return %c0_i32, %c0_i32_0 : i32, i32
  }
  func.func @transform_6(%arg0: i32) -> (i32, i32) {
    %c0_i32 = arith.constant 0 : i32
    %c0_i32_0 = arith.constant 0 : i32
    %c0_i32_1 = arith.constant 0 : i32
    return %c0_i32, %c0_i32_0 : i32, i32
  }
  func.func @transform_7(%arg0: i32) -> (i32, i32) {
    %c0_i32 = arith.constant 0 : i32
    %c0_i32_0 = arith.constant 0 : i32
    %c0_i32_1 = arith.constant 0 : i32
    return %c0_i32, %c0_i32_0 : i32, i32
  }
  func.func @transform_8(%arg0: i32) -> (i32, i32) {
    %c0_i32 = arith.constant 0 : i32
    %c0_i32_0 = arith.constant 0 : i32
    return %arg0, %c0_i32 : i32, i32
  }
  func.func @transform_9(%arg0: i32) -> (i32, i32) {
    %c0_i32 = arith.constant 0 : i32
    %c0_i32_0 = arith.constant 0 : i32
    return %arg0, %c0_i32 : i32, i32
  }
}

module attributes {stable_mosaic.version = 11 : i64} {
  func.func @fff_kernel(%arg0: i32, %arg1: memref<16x32xbf16, #tpu.memory_space<vmem>>, %arg2: memref<32x384xbf16, #tpu.memory_space<vmem>>, %arg3: memref<1x384xf32, #tpu.memory_space<vmem>>, %arg4: memref<128x128xbf16, #tpu.memory_space<vmem>>, %arg5: memref<1x128xf32, #tpu.memory_space<vmem>>, %arg6: memref<128x256xbf16, #tpu.memory_space<vmem>>, %arg7: memref<1x256xf32, #tpu.memory_space<vmem>>, %arg8: memref<256x128xbf16, #tpu.memory_space<vmem>>, %arg9: memref<16x128xf32, #tpu.memory_space<vmem>>, %arg10: memref<16x128xf32, #tpu.memory_space<vmem>>) attributes {dimension_semantics = [#tpu.dimension_semantics<parallel>], iteration_bounds = array<i64: 1>, scalar_prefetch = 0 : i64, scratch_operands = 0 : i64, tpu.core_type = #tpu.core_type<tc>, window_params = [{transform_indices = @transform_0, window_bounds = array<i64: 16, 32>}, {pipeline_mode = #tpu.pipeline_mode<synchronous>, transform_indices = @transform_1, window_bounds = array<i64: 32, 384>}, {pipeline_mode = #tpu.pipeline_mode<synchronous>, transform_indices = @transform_2, window_bounds = array<i64: 1, 384>}, {pipeline_mode = #tpu.pipeline_mode<synchronous>, transform_indices = @transform_3, window_bounds = array<i64: 128, 128>}, {pipeline_mode = #tpu.pipeline_mode<synchronous>, transform_indices = @transform_4, window_bounds = array<i64: 1, 128>}, {pipeline_mode = #tpu.pipeline_mode<synchronous>, transform_indices = @transform_5, window_bounds = array<i64: 128, 256>}, {pipeline_mode = #tpu.pipeline_mode<synchronous>, transform_indices = @transform_6, window_bounds = array<i64: 1, 256>}, {pipeline_mode = #tpu.pipeline_mode<synchronous>, transform_indices = @transform_7, window_bounds = array<i64: 256, 128>}, {transform_indices = @transform_8, window_bounds = array<i64: 16, 128>}, {transform_indices = @transform_9, window_bounds = array<i64: 16, 128>}]} {
    %c0 = arith.constant 0 : index
    %c0_0 = arith.constant 0 : index
    %0 = vector.load %arg1[%c0, %c0_0] : memref<16x32xbf16, #tpu.memory_space<vmem>>, vector<16x32xbf16>
    %c0_1 = arith.constant 0 : index
    %c0_2 = arith.constant 0 : index
    %1 = vector.load %arg2[%c0_1, %c0_2] : memref<32x384xbf16, #tpu.memory_space<vmem>>, vector<32x384xbf16>
    %cst = arith.constant dense<0.000000e+00> : vector<16x384xf32>
    %2 = tpu.matmul %0, %1, %cst {dimension_numbers = #tpu.dot_dimension_numbers<[1], [0], [0], [1], [0, 0, 1, 1], [], []>} : vector<16x32xbf16>, vector<32x384xbf16>, vector<16x384xf32> -> vector<16x384xf32>
    %c0_3 = arith.constant 0 : index
    %c0_4 = arith.constant 0 : index
    %3 = vector.load %arg3[%c0_3, %c0_4] : memref<1x384xf32, #tpu.memory_space<vmem>>, vector<1x384xf32>
    %4 = vector.broadcast %3 : vector<1x384xf32> to vector<16x384xf32>
    %5 = arith.addf %2, %4 : vector<16x384xf32>
    %cst_5 = arith.constant 0.000000e+00 : f32
    %6 = vector.broadcast %cst_5 : f32 to vector<16x384xf32>
    %7 = arith.maximumf %5, %6 : vector<16x384xf32>
    %8 = vector.extract_strided_slice %7 {offsets = [0, 0], sizes = [16, 128], strides = [1, 1]} : vector<16x384xf32> to vector<16x128xf32>
    %9 = arith.truncf %8 : vector<16x128xf32> to vector<16x128xbf16>
    %c0_6 = arith.constant 0 : index
    %c0_7 = arith.constant 0 : index
    %10 = vector.load %arg4[%c0_6, %c0_7] : memref<128x128xbf16, #tpu.memory_space<vmem>>, vector<128x128xbf16>
    %cst_8 = arith.constant dense<0.000000e+00> : vector<16x128xf32>
    %11 = tpu.matmul %9, %10, %cst_8 {dimension_numbers = #tpu.dot_dimension_numbers<[1], [0], [0], [1], [0, 0, 1, 1], [], []>} : vector<16x128xbf16>, vector<128x128xbf16>, vector<16x128xf32> -> vector<16x128xf32>
    %c0_9 = arith.constant 0 : index
    %c0_10 = arith.constant 0 : index
    %12 = vector.load %arg5[%c0_9, %c0_10] : memref<1x128xf32, #tpu.memory_space<vmem>>, vector<1x128xf32>
    %13 = vector.broadcast %12 : vector<1x128xf32> to vector<16x128xf32>
    %14 = arith.addf %11, %13 : vector<16x128xf32>
    %cst_11 = arith.constant 0.000000e+00 : f32
    %15 = vector.broadcast %cst_11 : f32 to vector<16x128xf32>
    %16 = arith.cmpf oge, %14, %15 : vector<16x128xf32>
    %17 = arith.extui %16 : vector<16x128xi1> to vector<16x128xi32>
    %18 = arith.sitofp %17 : vector<16x128xi32> to vector<16x128xf32>
    %19 = arith.truncf %18 : vector<16x128xf32> to vector<16x128xbf16>
    %cst_12 = arith.constant 0.000000e+00 : f32
    %20 = vector.broadcast %cst_12 : f32 to vector<16x128xf32>
    %21 = arith.subf %20, %14 : vector<16x128xf32>
    %22 = math.exp %21 : vector<16x128xf32>
    %cst_13 = arith.constant 1.000000e+00 : f32
    %23 = vector.broadcast %cst_13 : f32 to vector<16x128xf32>
    %24 = arith.addf %23, %22 : vector<16x128xf32>
    %cst_14 = arith.constant 1.000000e+00 : f32
    %25 = vector.broadcast %cst_14 : f32 to vector<16x128xf32>
    %26 = arith.divf %25, %24 : vector<16x128xf32>
    %c0_15 = arith.constant 0 : index
    %c0_16 = arith.constant 0 : index
    %27 = vector.load %arg10[%c0_15, %c0_16] : memref<16x128xf32, #tpu.memory_space<vmem>>, vector<16x128xf32>
    tpu.vector_store %arg10[%c0_15, %c0_16], %26 {strides = array<i32>} : memref<16x128xf32, #tpu.memory_space<vmem>>, vector<16x128xf32>,
    %c0_17 = arith.constant 0 : index
    %c0_18 = arith.constant 0 : index
    %28 = vector.load %arg6[%c0_17, %c0_18] : memref<128x256xbf16, #tpu.memory_space<vmem>>, vector<128x256xbf16>
    %cst_19 = arith.constant dense<0.000000e+00> : vector<16x256xf32>
    %29 = tpu.matmul %19, %28, %cst_19 {dimension_numbers = #tpu.dot_dimension_numbers<[1], [0], [0], [1], [0, 0, 1, 1], [], []>} : vector<16x128xbf16>, vector<128x256xbf16>, vector<16x256xf32> -> vector<16x256xf32>
    %c0_20 = arith.constant 0 : index
    %c0_21 = arith.constant 0 : index
    %30 = vector.load %arg7[%c0_20, %c0_21] : memref<1x256xf32, #tpu.memory_space<vmem>>, vector<1x256xf32>
    %31 = vector.broadcast %30 : vector<1x256xf32> to vector<16x256xf32>
    %32 = arith.addf %29, %31 : vector<16x256xf32>
    %cst_22 = arith.constant 5.000000e-01 : f32
    %33 = vector.broadcast %cst_22 : f32 to vector<16x256xf32>
    %34 = arith.cmpf olt, %32, %33 : vector<16x256xf32>
    %35 = arith.extui %34 : vector<16x256xi1> to vector<16x256xi32>
    %36 = arith.sitofp %35 : vector<16x256xi32> to vector<16x256xf32>
    %37 = vector.extract_strided_slice %7 {offsets = [0, 128], sizes = [16, 256], strides = [1, 1]} : vector<16x384xf32> to vector<16x256xf32>
    %38 = arith.mulf %36, %37 : vector<16x256xf32>
    %39 = arith.truncf %38 : vector<16x256xf32> to vector<16x256xbf16>
    %c0_23 = arith.constant 0 : index
    %c0_24 = arith.constant 0 : index
    %40 = vector.load %arg8[%c0_23, %c0_24] : memref<256x128xbf16, #tpu.memory_space<vmem>>, vector<256x128xbf16>
    %cst_25 = arith.constant dense<0.000000e+00> : vector<16x128xf32>
    %41 = tpu.matmul %39, %40, %cst_25 {dimension_numbers = #tpu.dot_dimension_numbers<[1], [0], [0], [1], [0, 0, 1, 1], [], []>} : vector<16x256xbf16>, vector<256x128xbf16>, vector<16x128xf32> -> vector<16x128xf32>
    %c0_26 = arith.constant 0 : index
    %c0_27 = arith.constant 0 : index
    %42 = vector.load %arg9[%c0_26, %c0_27] : memref<16x128xf32, #tpu.memory_space<vmem>>, vector<16x128xf32>
    tpu.vector_store %arg9[%c0_26, %c0_27], %41 {strides = array<i32>} : memref<16x128xf32, #tpu.memory_space<vmem>>, vector<16x128xf32>,
    return
  }
  func.func @transform_0(%arg0: i32) -> (i32, i32) {
    %c0_i32 = arith.constant 0 : i32
    %c0_i32_0 = arith.constant 0 : i32
    return %arg0, %c0_i32 : i32, i32
  }
  func.func @transform_1(%arg0: i32) -> (i32, i32) {
    %c0_i32 = arith.constant 0 : i32
    %c0_i32_0 = arith.constant 0 : i32
    %c0_i32_1 = arith.constant 0 : i32
    return %c0_i32, %c0_i32_0 : i32, i32
  }
  func.func @transform_2(%arg0: i32) -> (i32, i32) {
    %c0_i32 = arith.constant 0 : i32
    %c0_i32_0 = arith.constant 0 : i32
    %c0_i32_1 = arith.constant 0 : i32
    return %c0_i32, %c0_i32_0 : i32, i32
  }
  func.func @transform_3(%arg0: i32) -> (i32, i32) {
    %c0_i32 = arith.constant 0 : i32
    %c0_i32_0 = arith.constant 0 : i32
    %c0_i32_1 = arith.constant 0 : i32
    return %c0_i32, %c0_i32_0 : i32, i32
  }
  func.func @transform_4(%arg0: i32) -> (i32, i32) {
    %c0_i32 = arith.constant 0 : i32
    %c0_i32_0 = arith.constant 0 : i32
    %c0_i32_1 = arith.constant 0 : i32
    return %c0_i32, %c0_i32_0 : i32, i32
  }
  func.func @transform_5(%arg0: i32) -> (i32, i32) {
    %c0_i32 = arith.constant 0 : i32
    %c0_i32_0 = arith.constant 0 : i32
    %c0_i32_1 = arith.constant 0 : i32
    return %c0_i32, %c0_i32_0 : i32, i32
  }
  func.func @transform_6(%arg0: i32) -> (i32, i32) {
    %c0_i32 = arith.constant 0 : i32
    %c0_i32_0 = arith.constant 0 : i32
    %c0_i32_1 = arith.constant 0 : i32
    return %c0_i32, %c0_i32_0 : i32, i32
  }
  func.func @transform_7(%arg0: i32) -> (i32, i32) {
    %c0_i32 = arith.constant 0 : i32
    %c0_i32_0 = arith.constant 0 : i32
    %c0_i32_1 = arith.constant 0 : i32
    return %c0_i32, %c0_i32_0 : i32, i32
  }
  func.func @transform_8(%arg0: i32) -> (i32, i32) {
    %c0_i32 = arith.constant 0 : i32
    %c0_i32_0 = arith.constant 0 : i32
    return %arg0, %c0_i32 : i32, i32
  }
  func.func @transform_9(%arg0: i32) -> (i32, i32) {
    %c0_i32 = arith.constant 0 : i32
    %c0_i32_0 = arith.constant 0 : i32
    return %arg0, %c0_i32 : i32, i32
  }
}

</mosaic_0001>

<bundles_post_ra>
// kernel: tpu_custom_call.1
= control target key start
LH: loop header
LB: loop body
LE: loop exit
PB: predicated region body
PF: predicated region fallthrough
CT: control target
= control target key end

     0   :  { %15 = vsyncpa [#allocation3], 0  ;;  %s1497_s0 = inlined_call_operand.hbm [shape: bf16[16,32], index: 0, kind: input, shape index: {}]   ;;  %s1498_s1 = inlined_call_operand.hbm [shape: bf16[32,384], index: 1, kind: input, shape index: {}]   ;;  %s1499_s2 = inlined_call_operand.hbm [shape: f32[1,384], index: 2, kind: input, shape index: {}]   ;;  %s1500_s3 = inlined_call_operand.hbm [shape: bf16[128,128], index: 3, kind: input, shape index: {}]   ;;  %s1501_s4 = inlined_call_operand.hbm [shape: f32[1,128], index: 4, kind: input, shape index: {}]   ;;  %s1502_s5 = inlined_call_operand.hbm [shape: bf16[128,256], index: 5, kind: input, shape index: {}]   ;;  %s1503_s6 = inlined_call_operand.hbm [shape: f32[1,256], index: 6, kind: input, shape index: {}]   ;;  %s1504_s7 = inlined_call_operand.hbm [shape: bf16[256,128], index: 7, kind: input, shape index: {}]   ;;  %s1505_s8 = inlined_call_operand.hbm [shape: f32[16,128], index: 8, kind: output, shape index: {0}]   ;;  %s1506_s9 = inlined_call_operand.hbm [shape: f32[16,128], index: 9, kind: output, shape index: {1}]  }
   0x1   :  { %16 = vsyncpa [#allocation6], 0 }
   0x2   :  { %17 = vsyncpa [#allocation9], 0 }
   0x3   :  { %18 = vsyncpa [#allocation12], 0 }
   0x4   :  { %19 = vsyncpa [#allocation15], 0 }
   0x5   :  { %20 = vsyncpa [#allocation4], 0 }
   0x6   :  { %21 = vsyncpa [#allocation18], 0  ;;  %s1245_s30 = smov [#allocation5]   ;;  %s1011_s13 = scalar_lea.hbm %s1498_s1, 768 }
   0x7   :  { %s39_s10 = sshll.u32 %s1245_s30, 4  ;;  %p1012_p0 = scmp.ne.s32.totalorder %s1498_s1, %s1011_s13  ;;  %s40_s10 = int_to_ptr.vmem [resolvable:$true] %s39_s10 }
   0x8   :  { %p1015_p1 = scmp.lt.u32.totalorder %s1011_s13, %s1498_s1 }
   0xa   :  { %p1017_p2 = pnand %p1015_p1, %p1012_p0 }
   0xc   :  { %1020 = shalt.err (!%p1017_p2)
}
   0xd   :  { %s1021_s18 = scalar_lea.vmem %s40_s10, 768  ;;  %p1026_p4 = scmp.lt.s32.totalorder %s40_s10, %s40_s10 }
   0xe   :  { %p1022_p3 = scmp.ne.s32.totalorder %s40_s10, %s1021_s18  ;;  %p1027_p5 = scmp.lt.s32.totalorder %s1021_s18, %s1021_s18 }
  0x10   :  { %p1028_p6 = por %p1027_p5, %p1026_p4 }
  0x12   :  { %p1029_p7 = pnand %p1028_p6, %p1022_p3 }
  0x14   :  { %1032 = shalt.err (!%p1029_p7)
}
  0x15   :  { %s1246_s19 = smov 192   ;;  %s1247_s20 = smov 12  }
  0x16   :  { %45 = dma.hbm_to_vmem [thread:$0]  %s1498_s1, 768, %s40_s10, [#allocation6], %s1246_s19, %s1246_s19, %s1247_s20  }
  0x17   :  { %s1248_s23 = smov [#allocation8]   ;;  %s1249_s25 = smov [#allocation11]  }
  0x18   :  { %s61_s24 = sshll.u32 %s1248_s23, 4  ;;  %s83_s26 = sshll.u32 %s1249_s25, 4  ;;  %s62_s24 = int_to_ptr.vmem [resolvable:$true] %s61_s24  ;;  %s84_s26 = int_to_ptr.vmem [resolvable:$true] %s83_s26 }
  0x19   :  { %s1033_s29 = scalar_lea.hbm %s1500_s3, 1024 }
  0x1a   :  { %p1034_p8 = scmp.ne.s32.totalorder %s1500_s3, %s1033_s29  ;;  %p1037_p9 = scmp.lt.u32.totalorder %s1033_s29, %s1500_s3 }
  0x1c   :  { %p1039_p10 = pnand %p1037_p9, %p1034_p8 }
  0x1e   :  { %1042 = shalt.err (!%p1039_p10)
}
  0x1f   :  { %s1043_s1 = scalar_lea.vmem %s62_s24, 1024  ;;  %p1048_p12 = scmp.lt.s32.totalorder %s62_s24, %s62_s24 }
  0x20   :  { %p1044_p11 = scmp.ne.s32.totalorder %s62_s24, %s1043_s1  ;;  %p1049_p13 = scmp.lt.s32.totalorder %s1043_s1, %s1043_s1 }
  0x22   :  { %p1050_p0 = por %p1049_p13, %p1048_p12 }
  0x24   :  { %p1051_p1 = pnand %p1050_p0, %p1044_p11 }
  0x26   :  { %1054 = shalt.err (!%p1051_p1)
}
  0x27   :  { %s1250_s10 = smov 64   ;;  %s1251_s14 = smov 4  }
  0x28   :  { %67 = dma.hbm_to_vmem [thread:$0]  %s1500_s3, 1024, %s62_s24, [#allocation9], %s1250_s10, %s1250_s10, %s1251_s14  }
  0x29   :  { %s1055_s19 = scalar_lea.hbm %s1502_s5, 2048 }
  0x2a   :  { %p1056_p2 = scmp.ne.s32.totalorder %s1502_s5, %s1055_s19  ;;  %p1059_p3 = scmp.lt.u32.totalorder %s1055_s19, %s1502_s5 }
  0x2c   :  { %p1061_p4 = pnand %p1059_p3, %p1056_p2 }
  0x2e   :  { %1064 = shalt.err (!%p1061_p4)
}
  0x2f   :  { %s1065_s25 = scalar_lea.vmem %s84_s26, 2048  ;;  %p1070_p6 = scmp.lt.s32.totalorder %s84_s26, %s84_s26 }
  0x30   :  { %p1066_p5 = scmp.ne.s32.totalorder %s84_s26, %s1065_s25  ;;  %p1071_p7 = scmp.lt.s32.totalorder %s1065_s25, %s1065_s25 }
  0x32   :  { %p1072_p8 = por %p1071_p7, %p1070_p6 }
  0x34   :  { %p1073_p9 = pnand %p1072_p8, %p1066_p5 }
  0x36   :  { %1076 = shalt.err (!%p1073_p9)
}
  0x37   :  { %s1252_s3 = smov 128   ;;  %s1253_s24 = smov 8  }
  0x38   :  { %89 = dma.hbm_to_vmem [thread:$0]  %s1502_s5, 2048, %s84_s26, [#allocation12], %s1252_s3, %s1252_s3, %s1253_s24  }
  0x39   :  { %s1254_s29 = smov [#allocation2]   ;;  %s1255_s11 = smov [#allocation7]  }
  0x3a   :  { %s27_s30 = sshll.u32 %s1254_s29, 4  ;;  %s52_s12 = sshll.u32 %s1255_s11, 4  ;;  %s28_s30 = int_to_ptr.vmem [resolvable:$true] %s27_s30  ;;  %s53_s12 = int_to_ptr.vmem [resolvable:$true] %s52_s12 }
  0x3b   :  { %s1077_s15 = scalar_lea.hbm %s1497_s0, 128 }
  0x3c   :  { %p1078_p10 = scmp.ne.s32.totalorder %s1497_s0, %s1077_s15  ;;  %p1081_p11 = scmp.lt.u32.totalorder %s1077_s15, %s1497_s0 }
  0x3e   :  { %p1083_p12 = pnand %p1081_p11, %p1078_p10 }
  0x40   :  { %1086 = shalt.err (!%p1083_p12)
}
  0x41   :  { %s1087_s5 = scalar_lea.vmem %s28_s30, 128  ;;  %p1092_p0 = scmp.lt.s32.totalorder %s28_s30, %s28_s30 }
  0x42   :  { %p1088_p13 = scmp.ne.s32.totalorder %s28_s30, %s1087_s5  ;;  %p1093_p1 = scmp.lt.s32.totalorder %s1087_s5, %s1087_s5 }
  0x44   :  { %p1094_p2 = por %p1093_p1, %p1092_p0 }
  0x46   :  { %p1095_p3 = pnand %p1094_p2, %p1088_p13 }
  0x48   :  { %1098 = shalt.err (!%p1095_p3)
}
  0x49   :  { %33 = dma.hbm_to_vmem [thread:$0]  %s1497_s0, 128, %s28_s30, [#allocation3], %s1250_s10, %s1250_s10, %s1251_s14  }
  0x4a   :  { %s1099_s23 = scalar_lea.hbm %s1499_s2, 48 }
  0x4b   :  { %p1100_p4 = scmp.ne.s32.totalorder %s1499_s2, %s1099_s23  ;;  %p1103_p5 = scmp.lt.u32.totalorder %s1099_s23, %s1499_s2 }
  0x4d   :  { %p1105_p6 = pnand %p1103_p5, %p1100_p4 }
  0x4f   :  { %1108 = shalt.err (!%p1105_p6)
}
  0x50   :  { %s1109_s11 = scalar_lea.vmem %s53_s12, 48  ;;  %s1113_s13 = scalar_lea.vmem %s53_s12, 64 }
  0x51   :  { %p1110_p7 = scmp.ne.s32.totalorder %s53_s12, %s1109_s11  ;;  %p1114_p8 = scmp.lt.s32.totalorder %s53_s12, %s53_s12 }
  0x52   :  { %p1115_p9 = scmp.lt.s32.totalorder %s1113_s13, %s1109_s11 }
  0x54   :  { %p1116_p10 = por %p1115_p9, %p1114_p8 }
  0x56   :  { %p1117_p11 = pnand %p1116_p10, %p1110_p7 }
  0x58   :  { %1120 = shalt.err (!%p1117_p11)
}
  0x59   :  { %55 = dma.hbm_to_vmem [thread:$0]  %s1499_s2, 48, %s53_s12, [#allocation6]  }
  0x5a   :  { %s1256_s1 = smov [#allocation10]   ;;  %s1257_s16 = smov [#allocation13]  }
  0x5b   :  { %s74_s15 = sshll.u32 %s1256_s1, 4  ;;  %s96_s17 = sshll.u32 %s1257_s16, 4  ;;  %s75_s15 = int_to_ptr.vmem [resolvable:$true] %s74_s15  ;;  %s97_s17 = int_to_ptr.vmem [resolvable:$true] %s96_s17 }
  0x5c   :  { %s1121_s5 = scalar_lea.hbm %s1501_s4, 16 }
  0x5d   :  { %p1122_p12 = scmp.ne.s32.totalorder %s1501_s4, %s1121_s5  ;;  %p1125_p13 = scmp.lt.u32.totalorder %s1121_s5, %s1501_s4 }
  0x5f   :  { %p1127_p0 = pnand %p1125_p13, %p1122_p12 }
  0x61   :  { %1130 = shalt.err (!%p1127_p0)
}
  0x62   :  { %s1131_s2 = scalar_lea.vmem %s75_s15, 16  ;;  %s1135_s12 = scalar_lea.vmem %s75_s15, 32 }
  0x63   :  { %p1132_p1 = scmp.ne.s32.totalorder %s75_s15, %s1131_s2  ;;  %p1136_p2 = scmp.lt.s32.totalorder %s75_s15, %s75_s15 }
  0x64   :  { %p1137_p3 = scmp.lt.s32.totalorder %s1135_s12, %s1131_s2 }
  0x66   :  { %p1138_p4 = por %p1137_p3, %p1136_p2 }
  0x68   :  { %p1139_p5 = pnand %p1138_p4, %p1132_p1 }
  0x6a   :  { %1142 = shalt.err (!%p1139_p5)
}
  0x6b   :  { %77 = dma.hbm_to_vmem [thread:$0]  %s1501_s4, 16, %s75_s15, [#allocation9]  }
  0x6c   :  { %s1143_s29 = scalar_lea.hbm %s1503_s6, 32 }
  0x6d   :  { %p1144_p6 = scmp.ne.s32.totalorder %s1503_s6, %s1143_s29  ;;  %p1147_p7 = scmp.lt.u32.totalorder %s1143_s29, %s1503_s6 }
  0x6f   :  { %p1149_p8 = pnand %p1147_p7, %p1144_p6 }
  0x71   :  { %1152 = shalt.err (!%p1149_p8)
}
  0x72   :  { %s1153_s1 = scalar_lea.vmem %s97_s17, 32  ;;  %p1158_p10 = scmp.lt.s32.totalorder %s97_s17, %s97_s17 }
  0x73   :  { %p1154_p9 = scmp.ne.s32.totalorder %s97_s17, %s1153_s1  ;;  %p1159_p11 = scmp.lt.s32.totalorder %s1153_s1, %s1153_s1 }
  0x75   :  { %p1160_p12 = por %p1159_p11, %p1158_p10 }
  0x77   :  { %p1161_p13 = pnand %p1160_p12, %p1154_p9 }
  0x79   :  { %1164 = shalt.err (!%p1161_p13)
}
  0x7a   :  { %99 = dma.hbm_to_vmem [thread:$0]  %s1503_s6, 32, %s97_s17, [#allocation12]  }
  0x7b   :  { %s1258_s16 = smov [#allocation14]   ;;  %s1165_s26 = scalar_lea.hbm %s1504_s7, 2048 }
  0x7c   :  { %s105_s18 = sshll.u32 %s1258_s16, 4  ;;  %p1166_p0 = scmp.ne.s32.totalorder %s1504_s7, %s1165_s26  ;;  %s106_s18 = int_to_ptr.vmem [resolvable:$true] %s105_s18 }
  0x7d   :  { %p1169_p1 = scmp.lt.u32.totalorder %s1165_s26, %s1504_s7 }
  0x7f   :  { %p1171_p2 = pnand %p1169_p1, %p1166_p0 }
  0x81   :  { %1174 = shalt.err (!%p1171_p2)
}
  0x82   :  { %s1175_s12 = scalar_lea.vmem %s106_s18, 2048  ;;  %p1180_p4 = scmp.lt.s32.totalorder %s106_s18, %s106_s18 }
  0x83   :  { %p1176_p3 = scmp.ne.s32.totalorder %s106_s18, %s1175_s12  ;;  %p1181_p5 = scmp.lt.s32.totalorder %s1175_s12, %s1175_s12 }
  0x85   :  { %p1182_p6 = por %p1181_p5, %p1180_p4 }
  0x87   :  { %p1183_p7 = pnand %p1182_p6, %p1176_p3 }
  0x89   :  { %1186 = shalt.err (!%p1183_p7)
}
  0x8a   :  { %111 = dma.hbm_to_vmem [thread:$0]  %s1504_s7, 2048, %s106_s18, [#allocation15], %s1250_s10, %s1250_s10, %s1251_s14  }
  0x8b   :  { %1231 = dma.done.wait [#allocation3], 128  }
  0x8c   :  { %1232 = vsyncadd [#allocation3], 4294967168 }
  0x8d   :  { %1233 = dma.done.wait [#allocation6], 816  }
  0x8e   :  { %1234 = vsyncadd [#allocation6], 4294966480 }
  0x8f   :  { %1235 = dma.done.wait [#allocation9], 1040  }
  0x90   :  { %1236 = vsyncadd [#allocation9], 4294966256 }
  0x91   :  { %1237 = dma.done.wait [#allocation12], 2080  }
  0x92   :  { %1238 = vsyncadd [#allocation12], 4294965216 }
  0x93   :  { %1239 = dma.done.wait [#allocation15], 2048  }
  0x94   :  { %1240 = vsyncadd [#allocation15], 4294965248  ;;  %v1259_v0 = vmov 0   ;;  %v1260_v1 = vmov 0.0   ;;  %v946_v2 = vld [vmem:[#allocation5 + $0x4] ss:$12 sps:$4 sm:$0xff]   ;;  %v149_v31 = vlaneseq }
  0x95   :  { %237 = vmatprep.mubr.bf16.mxu1 %v1259_v0  ;;  %906 = vmatprep.subr.bf16.mxu0 %v1260_v1  ;;  %v948_v3 = vld [vmem:[#allocation5] ss:$12 sps:$4 sm:$0xff]   ;;  %v949_v4 = vld [vmem:[#allocation5 + $0x1c] ss:$12 sps:$4 sm:$0xff]   ;;  %v951_v5 = vld [vmem:[#allocation5 + $0x18] ss:$12 sps:$4 sm:$0xff]  }
  0x96   :  { %205 = vmatprep.subr.bf16.mxu1 %v946_v2  ;;  %v953_v6 = vld [vmem:[#allocation8] sm:$0xff]   ;;  %v954_v8 = vld [vmem:[#allocation8 + $0x8] sm:$0xff]   ;;  %vm201_vm0 = vcmask 261120   ;;  %v955_v9 = vld [vmem:[#allocation8 + $0x10] sm:$0xff]   ;;  %vm1261_vm1 = vmmov 0   ;;  %v1437_v32 = vshrl.u32 %v149_v31, 7 }
  0x97   :  { %206 = vmatpush1.bf16.msra.mxu1 %v948_v3  ;;  %v952_v7 = vld [vmem:[#allocation2] sm:$0xff]   ;;  %907 = vmatpush3.bf16.msra.mxu0 %v953_v6  ;;  %v956_v10 = vld [vmem:[#allocation8 + $0x18] sm:$0xff]   ;;  %v959_v13 = vld [vmem:[#allocation8 + $0x30] sm:$0xff]   ;;  %s1263_s7 = smov [#allocation17]  }
  0x98   :  { %207 = vmatprep.subr.bf16.mxu1 %v949_v4  ;;  %908 = vmatprep.subr.bf16.mxu0 %v1260_v1  ;;  %v957_v11 = vld [vmem:[#allocation8 + $0x20] sm:$0xff]   ;;  %v958_v12 = vld [vmem:[#allocation8 + $0x28] sm:$0xff]   ;;  %v960_v14 = vld [vmem:[#allocation8 + $0x38] sm:$0xff]   ;;  %v151_v33 = vsub.s32 0, %v1437_v32  ;;  %s786_s10 = sshll.u32 %s1263_s7, 4  ;;  %s787_s10 = int_to_ptr.vmem [resolvable:$true] %s786_s10 }
  0x99   :  { %922 = vmatprep.mubr.msk.bf16.mxu0 %vm1261_vm1, %v1260_v1  ;;  %v961_v15 = vld [vmem:[#allocation5 + $0x8] ss:$12 sps:$4 sm:$0xff]   ;;  %v962_v16 = vld [vmem:[#allocation5 + $0x20] ss:$12 sps:$4 sm:$0xff]   ;;  %v1440_v34 = vld [vmem:[#allocation7] sm:$0x7]  ;;  %p1192_p9 = scmp.lt.s32.totalorder %s787_s10, %s787_s10 }
  0x9a   :  { %v965_v17 = vld [vmem:[#allocation11 + $0x4] ss:$8 sps:$4 sm:$0xff]   ;;  %v963_v18 = vld [vmem:[#allocation11] ss:$8 sps:$4 sm:$0xff]   ;;  %v968_v19 = vld [vmem:[#allocation11 + $0x14] ss:$8 sps:$4 sm:$0xff]   ;;  %v152_v35 = vrot.slane %v1440_v34, %v151_v33 }
  0x9b   :  { %208 = vmatpush1.bf16.msra.mxu1 %v951_v5  ;;  %909 = vmatpush3.bf16.msra.mxu0 %v954_v8  ;;  %v966_v20 = vld [vmem:[#allocation11 + $0x10] ss:$8 sps:$4 sm:$0xff]   ;;  %v971_v21 = vld [vmem:[#allocation11 + $0x24] ss:$8 sps:$4 sm:$0xff]   ;;  %v969_v22 = vld [vmem:[#allocation11 + $0x20] ss:$8 sps:$4 sm:$0xff]  }
  0x9c   :  { %898 = vmatprep.subr.bf16.mxu1 %v1260_v1  ;;  %910 = vmatprep.subr.bf16.mxu0 %v1260_v1  ;;  %v974_v23 = vld [vmem:[#allocation11 + $0x34] ss:$8 sps:$4 sm:$0xff]   ;;  %v972_v24 = vld [vmem:[#allocation11 + $0x30] ss:$8 sps:$4 sm:$0xff]   ;;  %v977_v25 = vld [vmem:[#allocation11 + $0x44] ss:$8 sps:$4 sm:$0xff]  }
  0x9d   :  { %v975_v26 = vld [vmem:[#allocation11 + $0x40] ss:$8 sps:$4 sm:$0xff]   ;;  %v980_v27 = vld [vmem:[#allocation11 + $0x54] ss:$8 sps:$4 sm:$0xff]   ;;  %v978_v28 = vld [vmem:[#allocation11 + $0x50] ss:$8 sps:$4 sm:$0xff]  }
  0x9e   :  { %813 = vmatmul.mubr.msk.bf16.vlgmr.msra.gmra.mrb[0].mxu1 %vm201_vm0, %v952_v7  ;;  %v983_v29 = vld [vmem:[#allocation11 + $0x64] ss:$8 sps:$4 sm:$0xff]   ;;  %v981_v30 = vld [vmem:[#allocation11 + $0x60] ss:$8 sps:$4 sm:$0xff]   ;;  %v986_v45 = vld [vmem:[#allocation11 + $0x74] ss:$8 sps:$4 sm:$0xff]  }
  0x9f   :  { %911 = vmatpush3.bf16.msra.mxu0 %v955_v9  ;;  %902 = vmatprep.mubr.msk.bf16.mxu1 %vm1261_vm1, %v1260_v1  ;;  %v984_v46 = vld [vmem:[#allocation11 + $0x70] ss:$8 sps:$4 sm:$0xff]   ;;  %v987_v48 = vld [vmem:[#allocation14 + $0x40] sm:$0xff]   ;;  %v815_v61 = vld [vmem:[#allocation10] ss:$0 sm:$0xff]  ;;  %s1187_s14 = scalar_lea.vmem %s787_s10, 256 }
  0xa0   :  { %912 = vmatprep.subr.bf16.mxu0 %v1260_v1  ;;  %899 = vmatpush3.bf16.msra.mxu1 %v961_v15  ;;  %v988_v49 = vld [vmem:[#allocation14] sm:$0xff]   ;;  %v989_v50 = vld [vmem:[#allocation14 + $0x48] sm:$0xff]   ;;  %v991_v55 = vld [vmem:[#allocation14 + $0x50] sm:$0xff]   ;;  %v1262_v9 = vmov 1.0|1.0   ;;  %p1188_p8 = scmp.ne.s32.totalorder %s787_s10, %s1187_s14  ;;  %p1193_p10 = scmp.lt.s32.totalorder %s1187_s14, %s1187_s14 }
  0xa1   :  { %900 = vmatprep.subr.bf16.mxu1 %v1260_v1  ;;  %v990_v54 = vld [vmem:[#allocation14 + $0x8] sm:$0xff]   ;;  %v992_v56 = vld [vmem:[#allocation14 + $0x10] sm:$0xff]   ;;  %v993_v57 = vld [vmem:[#allocation14 + $0x58] sm:$0xff]  }
  0xa2   :  { %v994_v58 = vld [vmem:[#allocation14 + $0x18] sm:$0xff]   ;;  %v995_v59 = vld [vmem:[#allocation14 + $0x60] sm:$0xff]   ;;  %p1194_p11 = por %p1193_p10, %p1192_p9 }
  0xa3   :  { %913 = vmatpush3.bf16.msra.mxu0 %v956_v10  ;;  %v996_v60 = vld [vmem:[#allocation14 + $0x20] sm:$0xff]  }
  0xa4   :  { %914 = vmatprep.subr.bf16.mxu0 %v1260_v1  ;;  %901 = vmatpush3.bf16.msra.mxu1 %v962_v16  ;;  %v997_v16 = vld [vmem:[#allocation14 + $0x68] sm:$0xff]   ;;  %p1195_p12 = pnand %p1194_p11, %p1188_p8 }
  0xa5   :  { %537 = vmatprep.subr.bf16.mxu1 %v965_v17  ;;  %v998_v17 = vld [vmem:[#allocation14 + $0x28] sm:$0xff]  }
  0xa7   :  { %915 = vmatpush3.bf16.msra.mxu0 %v957_v11  ;;  %903 = vmatmul.mubr.msk.bf16.vlgmr.msra.gmra.mrb[4].mxu1 %vm201_vm0, %v952_v7 }
  0xa8   :  { %916 = vmatprep.subr.bf16.mxu0 %v1260_v1  ;;  %538 = vmatpush1.bf16.msra.mxu1 %v963_v18  ;;  %v999_v18 = vld [vmem:[#allocation14 + $0x70] sm:$0xff]  }
  0xa9   :  { %569 = vmatprep.mubr.bf16.mxu1 %v1259_v0  ;;  %539 = vmatprep.subr.bf16.mxu1 %v968_v19  ;;  %v1000_v19 = vld [vmem:[#allocation14 + $0x30] sm:$0xff]  }
  0xab   :  { %917 = vmatpush3.bf16.msra.mxu0 %v958_v12 }
  0xac   :  { %918 = vmatprep.subr.bf16.mxu0 %v1260_v1  ;;  %540 = vmatpush1.bf16.msra.mxu1 %v966_v20  ;;  %v1001_v20 = vld [vmem:[#allocation14 + $0x78] sm:$0xff]  }
  0xad   :  { %541 = vmatprep.subr.bf16.mxu1 %v971_v21  ;;  %v1002_v21 = vld [vmem:[#allocation14 + $0x38] sm:$0xff]  }
  0xaf   :  { %919 = vmatpush3.bf16.msra.mxu0 %v959_v13 }
  0xb0   :  { %920 = vmatprep.subr.bf16.mxu0 %v1260_v1  ;;  %542 = vmatpush1.bf16.msra.mxu1 %v969_v22  ;;  %v155_v22 = vsub.s32 1, %v1437_v32 }
  0xb1   :  { %543 = vmatprep.subr.bf16.mxu1 %v974_v23  ;;  %v159_v23 = vsub.s32 2, %v1437_v32 }
  0xb3   :  { %921 = vmatpush3.bf16.msra.mxu0 %v960_v14 }
  0xb4   :  { %544 = vmatpush1.bf16.msra.mxu1 %v972_v24  ;;  %876 = vmatprep.subr.bf16.mxu0 %v987_v48  ;;  %v445_v24 = vld [vmem:[#allocation13] sm:$0x3] }
  0xb5   :  { %545 = vmatprep.subr.bf16.mxu1 %v977_v25  ;;  %v156_v25 = vrot.slane %v1440_v34, %v155_v22 }
  0xb8   :  { %546 = vmatpush1.bf16.msra.mxu1 %v975_v26  ;;  %v160_v26 = vrot.slane %v1440_v34, %v159_v23 }
  0xb9   :  { %547 = vmatprep.subr.bf16.mxu1 %v980_v27  ;;  %v450_v27 = vrot.slane %v445_v24, %v151_v33 }
  0xbc   :  { %548 = vmatpush1.bf16.msra.mxu1 %v978_v28  ;;  %v454_v28 = vrot.slane %v445_v24, %v155_v22 }
  0xbd   :  { %549 = vmatprep.subr.bf16.mxu1 %v983_v29 }
  0xc0   :  { %550 = vmatpush1.bf16.msra.mxu1 %v981_v30 }
  0xc1   :  { %551 = vmatprep.subr.bf16.mxu1 %v986_v45 }
  0xc4   :  { %552 = vmatpush1.bf16.msra.mxu1 %v984_v46 }
 0x171   :  { %v239_v36 = vpop.f32.mrb[0].mxu1 }
 0x172   :  { %v240_v37 = vadd.f32 %v239_v36, %v152_v35  ;;  %v1445_v38 = vpop.f32.mrb[1].mxu1 }
 0x173   :  { %v243_v39 = vpop.f32.mrb[2].mxu1  ;;  %v242_v29 = vadd.f32 %v1445_v38, %v156_v25 }
 0x174   :  { %v244_v40 = vadd.f32 %v243_v39, %v152_v35  ;;  %v1447_v41 = vpop.f32.mrb[3].mxu1  ;;  %v289_v42 = vmax.f32 %v240_v37, 0.0 }
 0x175   :  { %v246_v35 = vadd.f32 %v1447_v41, %v156_v25 }
 0x176   :  { %v292_v43 = vmax.f32 %v244_v40, 0.0 }
 0x177   :  { %v293_v45 = vmax.f32 %v246_v35, 0.0 }
 0x178   :  { %v295_v44 = vpack.c.bf16 %v292_v43, %v289_v42  ;;  %v290_v43 = vmax.f32 %v242_v29, 0.0 }
 0x17a   :  { %923 = vmatmul.mubr.bf16.vlgmr.msra.gmra.mrb[0].mxu0 %v295_v44  ;;  %v1449_v47 = vpop.f32.mrb[4].mxu1 }
 0x17b   :  { %v904_v51 = vpop.f32.mrb[5].mxu1  ;;  %877 = vmatpush3.bf16.msra.mxu0 %v988_v49  ;;  %v283_v30 = vadd.f32 %v1449_v47, %v160_v26 }
 0x17c   :  { %v1451_v52 = vpop.f32.mrb[6].mxu1  ;;  %878 = vmatprep.subr.bf16.mxu0 %v989_v50 }
 0x17d   :  { %v905_v53 = vpop.f32.mrb[7].mxu1  ;;  %v286_v39 = vadd.f32 %v1451_v52, %v160_v26  ;;  %v291_v32 = vmax.f32 %v283_v30, 0.0 }
 0x17f   :  { %879 = vmatpush3.bf16.msra.mxu0 %v990_v54  ;;  %v294_v41 = vmax.f32 %v286_v39, 0.0 }
 0x180   :  { %880 = vmatprep.subr.bf16.mxu0 %v991_v55 }
 0x183   :  { %881 = vmatpush3.bf16.msra.mxu0 %v992_v56 }
 0x184   :  { %882 = vmatprep.subr.bf16.mxu0 %v993_v57 }
 0x187   :  { %883 = vmatpush3.bf16.msra.mxu0 %v994_v58 }
 0x188   :  { %884 = vmatprep.subr.bf16.mxu0 %v995_v59 }
 0x18b   :  { %885 = vmatpush3.bf16.msra.mxu0 %v996_v60 }
 0x18c   :  { %886 = vmatprep.subr.bf16.mxu0 %v997_v16 }
 0x18f   :  { %887 = vmatpush3.bf16.msra.mxu0 %v998_v17 }
 0x190   :  { %888 = vmatprep.subr.bf16.mxu0 %v999_v18 }
 0x193   :  { %889 = vmatpush3.bf16.msra.mxu0 %v1000_v19 }
 0x194   :  { %890 = vmatprep.subr.bf16.mxu0 %v1001_v20 }
 0x197   :  { %891 = vmatpush3.bf16.msra.mxu0 %v1002_v21 }
 0x24d   :  { %v401_v62 = vpop.f32.mrb[0].mxu0 }
 0x24e   :  { %v402_v63 = vadd.f32 %v815_v61, %v401_v62  ;;  %v924_v0 = vpop.f32.mrb[1].mxu0 }
 0x24f   :  { %v404_v2 = vpop.f32.mrb[2].mxu0 }
 0x250   :  { %v415_v3 = vsub.f32 0.0, %v402_v63  ;;  %v405_v4 = vadd.f32 %v815_v61, %v404_v2  ;;  %v925_v5 = vpop.f32.mrb[3].mxu0  ;;  %vm408_vm2 = vcmp.ge.f32.partialorder %v402_v63, 0.0 }
 0x252   :  { %v417_v6 = vmul.f32 1.442695, %v415_v3  ;;  %vm409_vm3 = vcmp.ge.f32.partialorder %v405_v4, 0.0  ;;  %v416_v7 = vsub.f32 0.0, %v405_v4 }
 0x253   :  { %vm842_vm4 = vmpackc.low %vm409_vm3, %vm408_vm2 }
 0x254   :  { %1003 = vpow2.f32 %v417_v6  ;;  %v419_v8 = vmul.f32 1.442695, %v416_v7  ;;  %843 = vmatmul.mubr.msk.bf16.vlgmr.msra.gmra.mrb[8].mxu1 %vm842_vm4, %v1262_v9 }
 0x256   :  { %1005 = vpow2.f32 %v419_v8 }
 0x25e   :  { %v1004_v10 = vpop.eup %1003 }
 0x25f   :  { %v421_v11 = vadd.f32 1.0, %v1004_v10 }
 0x260   :  { %v1006_v12 = vpop.eup %1005 }
 0x261   :  { %1007 = vrcp.f32 %v421_v11  ;;  %v422_v13 = vadd.f32 1.0, %v1006_v12 }
 0x263   :  { %1009 = vrcp.f32 %v422_v13 }
 0x26b   :  { %v1008_v14 = vpop.eup %1007 }
 0x26c   :  { %427 = vst [vmem:[#allocation17] sm:$0xff] %v1008_v14 }
 0x26d   :  { %v1010_v15 = vpop.eup %1009 }
 0x26e   :  { %428 = vst [vmem:[#allocation17 + $0x8] sm:$0xff] %v1010_v15 }
 0x327   :  { %v571_v31 = vpop.f32.mrb[8].mxu1 }
 0x328   :  { %v572_v36 = vadd.f32 %v571_v31, %v450_v27  ;;  %v573_v37 = vpop.f32.mrb[9].mxu1 }
 0x329   :  { %v574_v40 = vadd.f32 %v573_v37, %v454_v28  ;;  %v575_v42 = vpop.f32.mrb[10].mxu1 }
 0x32a   :  { %vm580_vm5 = vcmp.lt.f32.partialorder %v572_v36, 0.5  ;;  %v576_v34 = vadd.f32 %v575_v42, %v450_v27  ;;  %v577_v44 = vpop.f32.mrb[11].mxu1 }
 0x32b   :  { %v844_v33 = vsel %vm580_vm5, 1.0, %v1260_v1  ;;  %vm581_vm6 = vcmp.lt.f32.partialorder %v574_v40, 0.5  ;;  %v578_v38 = vadd.f32 %v577_v44, %v454_v28 }
 0x32c   :  { %v592_v46 = vmul.f32 %v844_v33, %v290_v43  ;;  %v845_v47 = vsel %vm581_vm6, 1.0, %v1260_v1  ;;  %vm582_vm7 = vcmp.lt.f32.partialorder %v576_v34, 0.5 }
 0x32d   :  { %v593_v48 = vmul.f32 %v845_v47, %v291_v32  ;;  %v846_v49 = vsel %vm582_vm7, 1.0, %v1260_v1  ;;  %vm583_vm8 = vcmp.lt.f32.partialorder %v578_v38, 0.5 }
 0x32e   :  { %v594_v50 = vmul.f32 %v846_v49, %v293_v45  ;;  %v847_v51 = vsel %vm583_vm8, 1.0, %v1260_v1 }
 0x32f   :  { %v595_v52 = vmul.f32 %v847_v51, %v294_v41 }
 0x330   :  { %v596_v53 = vpack.c.bf16 %v594_v50, %v592_v46 }
 0x331   :  { %v597_v54 = vpack.c.bf16 %v595_v52, %v593_v48 }
 0x333   :  { %758 = vmatprep.mubr.bf16.mxu0 %v597_v54 }
 0x334   :  { %759 = vmatmul.mubr.bf16.vlgmr.msra.gmra.mrb[4].mxu0 %v596_v53 }
 0x335   :  { %1198 = shalt.err (!%p1195_p12)
}
 0x336   :  { %s1199_s27 = scalar_lea.hbm %s1506_s9, 256 }
 0x337   :  { %p1200_p13 = scmp.ne.s32.totalorder %s1506_s9, %s1199_s27  ;;  %p1203_p0 = scmp.lt.u32.totalorder %s1199_s27, %s1506_s9 }
 0x339   :  { %p1205_p1 = pnand %p1203_p0, %p1200_p13 }
 0x33b   :  { %1208 = shalt.err (!%p1205_p1)
}
 0x33c   :  { %792 = dma.vmem_to_hbm [thread:$0]  %s787_s10, 256, %s1506_s9, [#allocation18], %s1252_s3, %s1252_s3, %s1253_s24  }
 0x33d   :  { %s1264_s1 = smov [#allocation16]  }
 0x33e   :  { %s774_s4 = sshll.u32 %s1264_s1, 4  ;;  %s775_s4 = int_to_ptr.vmem [resolvable:$true] %s774_s4 }
 0x33f   :  { %s1209_s15 = scalar_lea.vmem %s775_s4, 256  ;;  %p1214_p3 = scmp.lt.s32.totalorder %s775_s4, %s775_s4 }
 0x340   :  { %p1210_p2 = scmp.ne.s32.totalorder %s775_s4, %s1209_s15  ;;  %p1215_p4 = scmp.lt.s32.totalorder %s1209_s15, %s1209_s15 }
 0x342   :  { %p1216_p5 = por %p1215_p4, %p1214_p3 }
 0x344   :  { %p1217_p6 = pnand %p1216_p5, %p1210_p2 }
 0x407   :  { %v892_v1 = vpop.f32.mrb[4].mxu0 }
 0x408   :  { %v893_v55 = vpop.f32.mrb[5].mxu0 }
 0x409   :  { %v894_v56 = vadd.f32 %v893_v55, %v892_v1  ;;  %v895_v57 = vpop.f32.mrb[6].mxu0 }
 0x40a   :  { %v896_v58 = vpop.f32.mrb[7].mxu0 }
 0x40b   :  { %767 = vst [vmem:[#allocation16] sm:$0xff] %v894_v56  ;;  %v897_v59 = vadd.f32 %v896_v58, %v895_v57 }
 0x40d   :  { %768 = vst [vmem:[#allocation16 + $0x8] sm:$0xff] %v897_v59 }
 0x40e   :  { %1220 = shalt.err (!%p1217_p6)
}
 0x40f   :  { %s1221_s18 = scalar_lea.hbm %s1505_s8, 256 }
 0x410   :  { %p1222_p7 = scmp.ne.s32.totalorder %s1505_s8, %s1221_s18  ;;  %p1225_p8 = scmp.lt.u32.totalorder %s1221_s18, %s1505_s8 }
 0x412   :  { %p1227_p9 = pnand %p1225_p8, %p1222_p7 }
 0x414   :  { %1230 = shalt.err (!%p1227_p9)
}
 0x415   :  { %780 = dma.vmem_to_hbm [thread:$0]  %s775_s4, 256, %s1505_s8, [#allocation4], %s1252_s3, %s1252_s3, %s1253_s24  }
 0x416   :  { %1241 = dma.done.wait [#allocation4], 256  }
 0x417   :  { %1242 = vsyncadd [#allocation4], 4294967040 }
 0x418   :  { %1243 = dma.done.wait [#allocation18], 256  }
 0x419   :  { %1244 = vsyncadd [#allocation18], 4294967040 }
 0x41a   :  { %799 = vsyncpa [#allocation3], 1 }
 0x41b   :  { %800 = vsyncpa [#allocation6], 1 }
 0x41c   :  { %801 = vsyncpa [#allocation9], 1 }
 0x41d   :  { %802 = vsyncpa [#allocation12], 1 }
 0x41e   :  { %803 = vsyncpa [#allocation15], 1 }
 0x41f   :  { %804 = vsyncpa [#allocation4], 1 }
 0x420   :  { %805 = vsyncpa [#allocation18], 1 }

// kernel: tpu_custom_call.1
= control target key start
LH: loop header
LB: loop body
LE: loop exit
PB: predicated region body
PF: predicated region fallthrough
CT: control target
= control target key end

     0   :  { %15 = vsyncpa [#allocation3], 0  ;;  %s1497_s0 = inlined_call_operand.hbm [shape: bf16[16,32], index: 0, kind: input, shape index: {}]   ;;  %s1498_s1 = inlined_call_operand.hbm [shape: bf16[32,384], index: 1, kind: input, shape index: {}]   ;;  %s1499_s2 = inlined_call_operand.hbm [shape: f32[1,384], index: 2, kind: input, shape index: {}]   ;;  %s1500_s3 = inlined_call_operand.hbm [shape: bf16[128,128], index: 3, kind: input, shape index: {}]   ;;  %s1501_s4 = inlined_call_operand.hbm [shape: f32[1,128], index: 4, kind: input, shape index: {}]   ;;  %s1502_s5 = inlined_call_operand.hbm [shape: bf16[128,256], index: 5, kind: input, shape index: {}]   ;;  %s1503_s6 = inlined_call_operand.hbm [shape: f32[1,256], index: 6, kind: input, shape index: {}]   ;;  %s1504_s7 = inlined_call_operand.hbm [shape: bf16[256,128], index: 7, kind: input, shape index: {}]   ;;  %s1505_s8 = inlined_call_operand.hbm [shape: f32[16,128], index: 8, kind: output, shape index: {0}]   ;;  %s1506_s9 = inlined_call_operand.hbm [shape: f32[16,128], index: 9, kind: output, shape index: {1}]  }
   0x1   :  { %16 = vsyncpa [#allocation6], 0 }
   0x2   :  { %17 = vsyncpa [#allocation9], 0 }
   0x3   :  { %18 = vsyncpa [#allocation12], 0 }
   0x4   :  { %19 = vsyncpa [#allocation15], 0 }
   0x5   :  { %20 = vsyncpa [#allocation4], 0 }
   0x6   :  { %21 = vsyncpa [#allocation18], 0  ;;  %s1245_s30 = smov [#allocation5]   ;;  %s1011_s13 = scalar_lea.hbm %s1498_s1, 768 }
   0x7   :  { %s39_s10 = sshll.u32 %s1245_s30, 4  ;;  %p1012_p0 = scmp.ne.s32.totalorder %s1498_s1, %s1011_s13  ;;  %s40_s10 = int_to_ptr.vmem [resolvable:$true] %s39_s10 }
   0x8   :  { %p1015_p1 = scmp.lt.u32.totalorder %s1011_s13, %s1498_s1 }
   0xa   :  { %p1017_p2 = pnand %p1015_p1, %p1012_p0 }
   0xc   :  { %1020 = shalt.err (!%p1017_p2)
}
   0xd   :  { %s1021_s18 = scalar_lea.vmem %s40_s10, 768  ;;  %p1026_p4 = scmp.lt.s32.totalorder %s40_s10, %s40_s10 }
   0xe   :  { %p1022_p3 = scmp.ne.s32.totalorder %s40_s10, %s1021_s18  ;;  %p1027_p5 = scmp.lt.s32.totalorder %s1021_s18, %s1021_s18 }
  0x10   :  { %p1028_p6 = por %p1027_p5, %p1026_p4 }
  0x12   :  { %p1029_p7 = pnand %p1028_p6, %p1022_p3 }
  0x14   :  { %1032 = shalt.err (!%p1029_p7)
}
  0x15   :  { %s1246_s19 = smov 192   ;;  %s1247_s20 = smov 12  }
  0x16   :  { %45 = dma.hbm_to_vmem [thread:$0]  %s1498_s1, 768, %s40_s10, [#allocation6], %s1246_s19, %s1246_s19, %s1247_s20  }
  0x17   :  { %s1248_s23 = smov [#allocation8]   ;;  %s1249_s25 = smov [#allocation11]  }
  0x18   :  { %s61_s24 = sshll.u32 %s1248_s23, 4  ;;  %s83_s26 = sshll.u32 %s1249_s25, 4  ;;  %s62_s24 = int_to_ptr.vmem [resolvable:$true] %s61_s24  ;;  %s84_s26 = int_to_ptr.vmem [resolvable:$true] %s83_s26 }
  0x19   :  { %s1033_s29 = scalar_lea.hbm %s1500_s3, 1024 }
  0x1a   :  { %p1034_p8 = scmp.ne.s32.totalorder %s1500_s3, %s1033_s29  ;;  %p1037_p9 = scmp.lt.u32.totalorder %s1033_s29, %s1500_s3 }
  0x1c   :  { %p1039_p10 = pnand %p1037_p9, %p1034_p8 }
  0x1e   :  { %1042 = shalt.err (!%p1039_p10)
}
  0x1f   :  { %s1043_s1 = scalar_lea.vmem %s62_s24, 1024  ;;  %p1048_p12 = scmp.lt.s32.totalorder %s62_s24, %s62_s24 }
  0x20   :  { %p1044_p11 = scmp.ne.s32.totalorder %s62_s24, %s1043_s1  ;;  %p1049_p13 = scmp.lt.s32.totalorder %s1043_s1, %s1043_s1 }
  0x22   :  { %p1050_p0 = por %p1049_p13, %p1048_p12 }
  0x24   :  { %p1051_p1 = pnand %p1050_p0, %p1044_p11 }
  0x26   :  { %1054 = shalt.err (!%p1051_p1)
}
  0x27   :  { %s1250_s10 = smov 64   ;;  %s1251_s14 = smov 4  }
  0x28   :  { %67 = dma.hbm_to_vmem [thread:$0]  %s1500_s3, 1024, %s62_s24, [#allocation9], %s1250_s10, %s1250_s10, %s1251_s14  }
  0x29   :  { %s1055_s19 = scalar_lea.hbm %s1502_s5, 2048 }
  0x2a   :  { %p1056_p2 = scmp.ne.s32.totalorder %s1502_s5, %s1055_s19  ;;  %p1059_p3 = scmp.lt.u32.totalorder %s1055_s19, %s1502_s5 }
  0x2c   :  { %p1061_p4 = pnand %p1059_p3, %p1056_p2 }
  0x2e   :  { %1064 = shalt.err (!%p1061_p4)
}
  0x2f   :  { %s1065_s25 = scalar_lea.vmem %s84_s26, 2048  ;;  %p1070_p6 = scmp.lt.s32.totalorder %s84_s26, %s84_s26 }
  0x30   :  { %p1066_p5 = scmp.ne.s32.totalorder %s84_s26, %s1065_s25  ;;  %p1071_p7 = scmp.lt.s32.totalorder %s1065_s25, %s1065_s25 }
  0x32   :  { %p1072_p8 = por %p1071_p7, %p1070_p6 }
  0x34   :  { %p1073_p9 = pnand %p1072_p8, %p1066_p5 }
  0x36   :  { %1076 = shalt.err (!%p1073_p9)
}
  0x37   :  { %s1252_s3 = smov 128   ;;  %s1253_s24 = smov 8  }
  0x38   :  { %89 = dma.hbm_to_vmem [thread:$0]  %s1502_s5, 2048, %s84_s26, [#allocation12], %s1252_s3, %s1252_s3, %s1253_s24  }
  0x39   :  { %s1254_s29 = smov [#allocation2]   ;;  %s1255_s11 = smov [#allocation7]  }
  0x3a   :  { %s27_s30 = sshll.u32 %s1254_s29, 4  ;;  %s52_s12 = sshll.u32 %s1255_s11, 4  ;;  %s28_s30 = int_to_ptr.vmem [resolvable:$true] %s27_s30  ;;  %s53_s12 = int_to_ptr.vmem [resolvable:$true] %s52_s12 }
  0x3b   :  { %s1077_s15 = scalar_lea.hbm %s1497_s0, 128 }
  0x3c   :  { %p1078_p10 = scmp.ne.s32.totalorder %s1497_s0, %s1077_s15  ;;  %p1081_p11 = scmp.lt.u32.totalorder %s1077_s15, %s1497_s0 }
  0x3e   :  { %p1083_p12 = pnand %p1081_p11, %p1078_p10 }
  0x40   :  { %1086 = shalt.err (!%p1083_p12)
}
  0x41   :  { %s1087_s5 = scalar_lea.vmem %s28_s30, 128  ;;  %p1092_p0 = scmp.lt.s32.totalorder %s28_s30, %s28_s30 }
  0x42   :  { %p1088_p13 = scmp.ne.s32.totalorder %s28_s30, %s1087_s5  ;;  %p1093_p1 = scmp.lt.s32.totalorder %s1087_s5, %s1087_s5 }
  0x44   :  { %p1094_p2 = por %p1093_p1, %p1092_p0 }
  0x46   :  { %p1095_p3 = pnand %p1094_p2, %p1088_p13 }
  0x48   :  { %1098 = shalt.err (!%p1095_p3)
}
  0x49   :  { %33 = dma.hbm_to_vmem [thread:$0]  %s1497_s0, 128, %s28_s30, [#allocation3], %s1250_s10, %s1250_s10, %s1251_s14  }
  0x4a   :  { %s1099_s23 = scalar_lea.hbm %s1499_s2, 48 }
  0x4b   :  { %p1100_p4 = scmp.ne.s32.totalorder %s1499_s2, %s1099_s23  ;;  %p1103_p5 = scmp.lt.u32.totalorder %s1099_s23, %s1499_s2 }
  0x4d   :  { %p1105_p6 = pnand %p1103_p5, %p1100_p4 }
  0x4f   :  { %1108 = shalt.err (!%p1105_p6)
}
  0x50   :  { %s1109_s11 = scalar_lea.vmem %s53_s12, 48  ;;  %s1113_s13 = scalar_lea.vmem %s53_s12, 64 }
  0x51   :  { %p1110_p7 = scmp.ne.s32.totalorder %s53_s12, %s1109_s11  ;;  %p1114_p8 = scmp.lt.s32.totalorder %s53_s12, %s53_s12 }
  0x52   :  { %p1115_p9 = scmp.lt.s32.totalorder %s1113_s13, %s1109_s11 }
  0x54   :  { %p1116_p10 = por %p1115_p9, %p1114_p8 }
  0x56   :  { %p1117_p11 = pnand %p1116_p10, %p1110_p7 }
  0x58   :  { %1120 = shalt.err (!%p1117_p11)
}
  0x59   :  { %55 = dma.hbm_to_vmem [thread:$0]  %s1499_s2, 48, %s53_s12, [#allocation6]  }
  0x5a   :  { %s1256_s1 = smov [#allocation10]   ;;  %s1257_s16 = smov [#allocation13]  }
  0x5b   :  { %s74_s15 = sshll.u32 %s1256_s1, 4  ;;  %s96_s17 = sshll.u32 %s1257_s16, 4  ;;  %s75_s15 = int_to_ptr.vmem [resolvable:$true] %s74_s15  ;;  %s97_s17 = int_to_ptr.vmem [resolvable:$true] %s96_s17 }
  0x5c   :  { %s1121_s5 = scalar_lea.hbm %s1501_s4, 16 }
  0x5d   :  { %p1122_p12 = scmp.ne.s32.totalorder %s1501_s4, %s1121_s5  ;;  %p1125_p13 = scmp.lt.u32.totalorder %s1121_s5, %s1501_s4 }
  0x5f   :  { %p1127_p0 = pnand %p1125_p13, %p1122_p12 }
  0x61   :  { %1130 = shalt.err (!%p1127_p0)
}
  0x62   :  { %s1131_s2 = scalar_lea.vmem %s75_s15, 16  ;;  %s1135_s12 = scalar_lea.vmem %s75_s15, 32 }
  0x63   :  { %p1132_p1 = scmp.ne.s32.totalorder %s75_s15, %s1131_s2  ;;  %p1136_p2 = scmp.lt.s32.totalorder %s75_s15, %s75_s15 }
  0x64   :  { %p1137_p3 = scmp.lt.s32.totalorder %s1135_s12, %s1131_s2 }
  0x66   :  { %p1138_p4 = por %p1137_p3, %p1136_p2 }
  0x68   :  { %p1139_p5 = pnand %p1138_p4, %p1132_p1 }
  0x6a   :  { %1142 = shalt.err (!%p1139_p5)
}
  0x6b   :  { %77 = dma.hbm_to_vmem [thread:$0]  %s1501_s4, 16, %s75_s15, [#allocation9]  }
  0x6c   :  { %s1143_s29 = scalar_lea.hbm %s1503_s6, 32 }
  0x6d   :  { %p1144_p6 = scmp.ne.s32.totalorder %s1503_s6, %s1143_s29  ;;  %p1147_p7 = scmp.lt.u32.totalorder %s1143_s29, %s1503_s6 }
  0x6f   :  { %p1149_p8 = pnand %p1147_p7, %p1144_p6 }
  0x71   :  { %1152 = shalt.err (!%p1149_p8)
}
  0x72   :  { %s1153_s1 = scalar_lea.vmem %s97_s17, 32  ;;  %p1158_p10 = scmp.lt.s32.totalorder %s97_s17, %s97_s17 }
  0x73   :  { %p1154_p9 = scmp.ne.s32.totalorder %s97_s17, %s1153_s1  ;;  %p1159_p11 = scmp.lt.s32.totalorder %s1153_s1, %s1153_s1 }
  0x75   :  { %p1160_p12 = por %p1159_p11, %p1158_p10 }
  0x77   :  { %p1161_p13 = pnand %p1160_p12, %p1154_p9 }
  0x79   :  { %1164 = shalt.err (!%p1161_p13)
}
  0x7a   :  { %99 = dma.hbm_to_vmem [thread:$0]  %s1503_s6, 32, %s97_s17, [#allocation12]  }
  0x7b   :  { %s1258_s16 = smov [#allocation14]   ;;  %s1165_s26 = scalar_lea.hbm %s1504_s7, 2048 }
  0x7c   :  { %s105_s18 = sshll.u32 %s1258_s16, 4  ;;  %p1166_p0 = scmp.ne.s32.totalorder %s1504_s7, %s1165_s26  ;;  %s106_s18 = int_to_ptr.vmem [resolvable:$true] %s105_s18 }
  0x7d   :  { %p1169_p1 = scmp.lt.u32.totalorder %s1165_s26, %s1504_s7 }
  0x7f   :  { %p1171_p2 = pnand %p1169_p1, %p1166_p0 }
  0x81   :  { %1174 = shalt.err (!%p1171_p2)
}
  0x82   :  { %s1175_s12 = scalar_lea.vmem %s106_s18, 2048  ;;  %p1180_p4 = scmp.lt.s32.totalorder %s106_s18, %s106_s18 }
  0x83   :  { %p1176_p3 = scmp.ne.s32.totalorder %s106_s18, %s1175_s12  ;;  %p1181_p5 = scmp.lt.s32.totalorder %s1175_s12, %s1175_s12 }
  0x85   :  { %p1182_p6 = por %p1181_p5, %p1180_p4 }
  0x87   :  { %p1183_p7 = pnand %p1182_p6, %p1176_p3 }
  0x89   :  { %1186 = shalt.err (!%p1183_p7)
}
  0x8a   :  { %111 = dma.hbm_to_vmem [thread:$0]  %s1504_s7, 2048, %s106_s18, [#allocation15], %s1250_s10, %s1250_s10, %s1251_s14  }
  0x8b   :  { %1231 = dma.done.wait [#allocation3], 128  }
  0x8c   :  { %1232 = vsyncadd [#allocation3], 4294967168 }
  0x8d   :  { %1233 = dma.done.wait [#allocation6], 816  }
  0x8e   :  { %1234 = vsyncadd [#allocation6], 4294966480 }
  0x8f   :  { %1235 = dma.done.wait [#allocation9], 1040  }
  0x90   :  { %1236 = vsyncadd [#allocation9], 4294966256 }
  0x91   :  { %1237 = dma.done.wait [#allocation12], 2080  }
  0x92   :  { %1238 = vsyncadd [#allocation12], 4294965216 }
  0x93   :  { %1239 = dma.done.wait [#allocation15], 2048  }
  0x94   :  { %1240 = vsyncadd [#allocation15], 4294965248  ;;  %v1259_v0 = vmov 0   ;;  %v1260_v1 = vmov 0.0   ;;  %v946_v2 = vld [vmem:[#allocation5 + $0x4] ss:$12 sps:$4 sm:$0xff]   ;;  %v149_v31 = vlaneseq }
  0x95   :  { %237 = vmatprep.mubr.bf16.mxu1 %v1259_v0  ;;  %906 = vmatprep.subr.bf16.mxu0 %v1260_v1  ;;  %v948_v3 = vld [vmem:[#allocation5] ss:$12 sps:$4 sm:$0xff]   ;;  %v949_v4 = vld [vmem:[#allocation5 + $0x1c] ss:$12 sps:$4 sm:$0xff]   ;;  %v951_v5 = vld [vmem:[#allocation5 + $0x18] ss:$12 sps:$4 sm:$0xff]  }
  0x96   :  { %205 = vmatprep.subr.bf16.mxu1 %v946_v2  ;;  %v953_v6 = vld [vmem:[#allocation8] sm:$0xff]   ;;  %v954_v8 = vld [vmem:[#allocation8 + $0x8] sm:$0xff]   ;;  %vm201_vm0 = vcmask 261120   ;;  %v955_v9 = vld [vmem:[#allocation8 + $0x10] sm:$0xff]   ;;  %vm1261_vm1 = vmmov 0   ;;  %v1437_v32 = vshrl.u32 %v149_v31, 7 }
  0x97   :  { %206 = vmatpush1.bf16.msra.mxu1 %v948_v3  ;;  %v952_v7 = vld [vmem:[#allocation2] sm:$0xff]   ;;  %907 = vmatpush3.bf16.msra.mxu0 %v953_v6  ;;  %v956_v10 = vld [vmem:[#allocation8 + $0x18] sm:$0xff]   ;;  %v959_v13 = vld [vmem:[#allocation8 + $0x30] sm:$0xff]   ;;  %s1263_s7 = smov [#allocation17]  }
  0x98   :  { %207 = vmatprep.subr.bf16.mxu1 %v949_v4  ;;  %908 = vmatprep.subr.bf16.mxu0 %v1260_v1  ;;  %v957_v11 = vld [vmem:[#allocation8 + $0x20] sm:$0xff]   ;;  %v958_v12 = vld [vmem:[#allocation8 + $0x28] sm:$0xff]   ;;  %v960_v14 = vld [vmem:[#allocation8 + $0x38] sm:$0xff]   ;;  %v151_v33 = vsub.s32 0, %v1437_v32  ;;  %s786_s10 = sshll.u32 %s1263_s7, 4  ;;  %s787_s10 = int_to_ptr.vmem [resolvable:$true] %s786_s10 }
  0x99   :  { %922 = vmatprep.mubr.msk.bf16.mxu0 %vm1261_vm1, %v1260_v1  ;;  %v961_v15 = vld [vmem:[#allocation5 + $0x8] ss:$12 sps:$4 sm:$0xff]   ;;  %v962_v16 = vld [vmem:[#allocation5 + $0x20] ss:$12 sps:$4 sm:$0xff]   ;;  %v1440_v34 = vld [vmem:[#allocation7] sm:$0x7]  ;;  %p1192_p9 = scmp.lt.s32.totalorder %s787_s10, %s787_s10 }
  0x9a   :  { %v965_v17 = vld [vmem:[#allocation11 + $0x4] ss:$8 sps:$4 sm:$0xff]   ;;  %v963_v18 = vld [vmem:[#allocation11] ss:$8 sps:$4 sm:$0xff]   ;;  %v968_v19 = vld [vmem:[#allocation11 + $0x14] ss:$8 sps:$4 sm:$0xff]   ;;  %v152_v35 = vrot.slane %v1440_v34, %v151_v33 }
  0x9b   :  { %208 = vmatpush1.bf16.msra.mxu1 %v951_v5  ;;  %909 = vmatpush3.bf16.msra.mxu0 %v954_v8  ;;  %v966_v20 = vld [vmem:[#allocation11 + $0x10] ss:$8 sps:$4 sm:$0xff]   ;;  %v971_v21 = vld [vmem:[#allocation11 + $0x24] ss:$8 sps:$4 sm:$0xff]   ;;  %v969_v22 = vld [vmem:[#allocation11 + $0x20] ss:$8 sps:$4 sm:$0xff]  }
  0x9c   :  { %898 = vmatprep.subr.bf16.mxu1 %v1260_v1  ;;  %910 = vmatprep.subr.bf16.mxu0 %v1260_v1  ;;  %v974_v23 = vld [vmem:[#allocation11 + $0x34] ss:$8 sps:$4 sm:$0xff]   ;;  %v972_v24 = vld [vmem:[#allocation11 + $0x30] ss:$8 sps:$4 sm:$0xff]   ;;  %v977_v25 = vld [vmem:[#allocation11 + $0x44] ss:$8 sps:$4 sm:$0xff]  }
  0x9d   :  { %v975_v26 = vld [vmem:[#allocation11 + $0x40] ss:$8 sps:$4 sm:$0xff]   ;;  %v980_v27 = vld [vmem:[#allocation11 + $0x54] ss:$8 sps:$4 sm:$0xff]   ;;  %v978_v28 = vld [vmem:[#allocation11 + $0x50] ss:$8 sps:$4 sm:$0xff]  }
  0x9e   :  { %813 = vmatmul.mubr.msk.bf16.vlgmr.msra.gmra.mrb[0].mxu1 %vm201_vm0, %v952_v7  ;;  %v983_v29 = vld [vmem:[#allocation11 + $0x64] ss:$8 sps:$4 sm:$0xff]   ;;  %v981_v30 = vld [vmem:[#allocation11 + $0x60] ss:$8 sps:$4 sm:$0xff]   ;;  %v986_v45 = vld [vmem:[#allocation11 + $0x74] ss:$8 sps:$4 sm:$0xff]  }
  0x9f   :  { %911 = vmatpush3.bf16.msra.mxu0 %v955_v9  ;;  %902 = vmatprep.mubr.msk.bf16.mxu1 %vm1261_vm1, %v1260_v1  ;;  %v984_v46 = vld [vmem:[#allocation11 + $0x70] ss:$8 sps:$4 sm:$0xff]   ;;  %v987_v48 = vld [vmem:[#allocation14 + $0x40] sm:$0xff]   ;;  %v815_v61 = vld [vmem:[#allocation10] ss:$0 sm:$0xff]  ;;  %s1187_s14 = scalar_lea.vmem %s787_s10, 256 }
  0xa0   :  { %912 = vmatprep.subr.bf16.mxu0 %v1260_v1  ;;  %899 = vmatpush3.bf16.msra.mxu1 %v961_v15  ;;  %v988_v49 = vld [vmem:[#allocation14] sm:$0xff]   ;;  %v989_v50 = vld [vmem:[#allocation14 + $0x48] sm:$0xff]   ;;  %v991_v55 = vld [vmem:[#allocation14 + $0x50] sm:$0xff]   ;;  %v1262_v9 = vmov 1.0|1.0   ;;  %p1188_p8 = scmp.ne.s32.totalorder %s787_s10, %s1187_s14  ;;  %p1193_p10 = scmp.lt.s32.totalorder %s1187_s14, %s1187_s14 }
  0xa1   :  { %900 = vmatprep.subr.bf16.mxu1 %v1260_v1  ;;  %v990_v54 = vld [vmem:[#allocation14 + $0x8] sm:$0xff]   ;;  %v992_v56 = vld [vmem:[#allocation14 + $0x10] sm:$0xff]   ;;  %v993_v57 = vld [vmem:[#allocation14 + $0x58] sm:$0xff]  }
  0xa2   :  { %v994_v58 = vld [vmem:[#allocation14 + $0x18] sm:$0xff]   ;;  %v995_v59 = vld [vmem:[#allocation14 + $0x60] sm:$0xff]   ;;  %p1194_p11 = por %p1193_p10, %p1192_p9 }
  0xa3   :  { %913 = vmatpush3.bf16.msra.mxu0 %v956_v10  ;;  %v996_v60 = vld [vmem:[#allocation14 + $0x20] sm:$0xff]  }
  0xa4   :  { %914 = vmatprep.subr.bf16.mxu0 %v1260_v1  ;;  %901 = vmatpush3.bf16.msra.mxu1 %v962_v16  ;;  %v997_v16 = vld [vmem:[#allocation14 + $0x68] sm:$0xff]   ;;  %p1195_p12 = pnand %p1194_p11, %p1188_p8 }
  0xa5   :  { %537 = vmatprep.subr.bf16.mxu1 %v965_v17  ;;  %v998_v17 = vld [vmem:[#allocation14 + $0x28] sm:$0xff]  }
  0xa7   :  { %915 = vmatpush3.bf16.msra.mxu0 %v957_v11  ;;  %903 = vmatmul.mubr.msk.bf16.vlgmr.msra.gmra.mrb[4].mxu1 %vm201_vm0, %v952_v7 }
  0xa8   :  { %916 = vmatprep.subr.bf16.mxu0 %v1260_v1  ;;  %538 = vmatpush1.bf16.msra.mxu1 %v963_v18  ;;  %v999_v18 = vld [vmem:[#allocation14 + $0x70] sm:$0xff]  }
  0xa9   :  { %569 = vmatprep.mubr.bf16.mxu1 %v1259_v0  ;;  %539 = vmatprep.subr.bf16.mxu1 %v968_v19  ;;  %v1000_v19 = vld [vmem:[#allocation14 + $0x30] sm:$0xff]  }
  0xab   :  { %917 = vmatpush3.bf16.msra.mxu0 %v958_v12 }
  0xac   :  { %918 = vmatprep.subr.bf16.mxu0 %v1260_v1  ;;  %540 = vmatpush1.bf16.msra.mxu1 %v966_v20  ;;  %v1001_v20 = vld [vmem:[#allocation14 + $0x78] sm:$0xff]  }
  0xad   :  { %541 = vmatprep.subr.bf16.mxu1 %v971_v21  ;;  %v1002_v21 = vld [vmem:[#allocation14 + $0x38] sm:$0xff]  }
  0xaf   :  { %919 = vmatpush3.bf16.msra.mxu0 %v959_v13 }
  0xb0   :  { %920 = vmatprep.subr.bf16.mxu0 %v1260_v1  ;;  %542 = vmatpush1.bf16.msra.mxu1 %v969_v22  ;;  %v155_v22 = vsub.s32 1, %v1437_v32 }
  0xb1   :  { %543 = vmatprep.subr.bf16.mxu1 %v974_v23  ;;  %v159_v23 = vsub.s32 2, %v1437_v32 }
  0xb3   :  { %921 = vmatpush3.bf16.msra.mxu0 %v960_v14 }
  0xb4   :  { %544 = vmatpush1.bf16.msra.mxu1 %v972_v24  ;;  %876 = vmatprep.subr.bf16.mxu0 %v987_v48  ;;  %v445_v24 = vld [vmem:[#allocation13] sm:$0x3] }
  0xb5   :  { %545 = vmatprep.subr.bf16.mxu1 %v977_v25  ;;  %v156_v25 = vrot.slane %v1440_v34, %v155_v22 }
  0xb8   :  { %546 = vmatpush1.bf16.msra.mxu1 %v975_v26  ;;  %v160_v26 = vrot.slane %v1440_v34, %v159_v23 }
  0xb9   :  { %547 = vmatprep.subr.bf16.mxu1 %v980_v27  ;;  %v450_v27 = vrot.slane %v445_v24, %v151_v33 }
  0xbc   :  { %548 = vmatpush1.bf16.msra.mxu1 %v978_v28  ;;  %v454_v28 = vrot.slane %v445_v24, %v155_v22 }
  0xbd   :  { %549 = vmatprep.subr.bf16.mxu1 %v983_v29 }
  0xc0   :  { %550 = vmatpush1.bf16.msra.mxu1 %v981_v30 }
  0xc1   :  { %551 = vmatprep.subr.bf16.mxu1 %v986_v45 }
  0xc4   :  { %552 = vmatpush1.bf16.msra.mxu1 %v984_v46 }
 0x171   :  { %v239_v36 = vpop.f32.mrb[0].mxu1 }
 0x172   :  { %v240_v37 = vadd.f32 %v239_v36, %v152_v35  ;;  %v1445_v38 = vpop.f32.mrb[1].mxu1 }
 0x173   :  { %v243_v39 = vpop.f32.mrb[2].mxu1  ;;  %v242_v29 = vadd.f32 %v1445_v38, %v156_v25 }
 0x174   :  { %v244_v40 = vadd.f32 %v243_v39, %v152_v35  ;;  %v1447_v41 = vpop.f32.mrb[3].mxu1  ;;  %v289_v42 = vmax.f32 %v240_v37, 0.0 }
 0x175   :  { %v246_v35 = vadd.f32 %v1447_v41, %v156_v25 }
 0x176   :  { %v292_v43 = vmax.f32 %v244_v40, 0.0 }
 0x177   :  { %v293_v45 = vmax.f32 %v246_v35, 0.0 }
 0x178   :  { %v295_v44 = vpack.c.bf16 %v292_v43, %v289_v42  ;;  %v290_v43 = vmax.f32 %v242_v29, 0.0 }
 0x17a   :  { %923 = vmatmul.mubr.bf16.vlgmr.msra.gmra.mrb[0].mxu0 %v295_v44  ;;  %v1449_v47 = vpop.f32.mrb[4].mxu1 }
 0x17b   :  { %v904_v51 = vpop.f32.mrb[5].mxu1  ;;  %877 = vmatpush3.bf16.msra.mxu0 %v988_v49  ;;  %v283_v30 = vadd.f32 %v1449_v47, %v160_v26 }
 0x17c   :  { %v1451_v52 = vpop.f32.mrb[6].mxu1  ;;  %878 = vmatprep.subr.bf16.mxu0 %v989_v50 }
 0x17d   :  { %v905_v53 = vpop.f32.mrb[7].mxu1  ;;  %v286_v39 = vadd.f32 %v1451_v52, %v160_v26  ;;  %v291_v32 = vmax.f32 %v283_v30, 0.0 }
 0x17f   :  { %879 = vmatpush3.bf16.msra.mxu0 %v990_v54  ;;  %v294_v41 = vmax.f32 %v286_v39, 0.0 }
 0x180   :  { %880 = vmatprep.subr.bf16.mxu0 %v991_v55 }
 0x183   :  { %881 = vmatpush3.bf16.msra.mxu0 %v992_v56 }
 0x184   :  { %882 = vmatprep.subr.bf16.mxu0 %v993_v57 }
 0x187   :  { %883 = vmatpush3.bf16.msra.mxu0 %v994_v58 }
 0x188   :  { %884 = vmatprep.subr.bf16.mxu0 %v995_v59 }
 0x18b   :  { %885 = vmatpush3.bf16.msra.mxu0 %v996_v60 }
 0x18c   :  { %886 = vmatprep.subr.bf16.mxu0 %v997_v16 }
 0x18f   :  { %887 = vmatpush3.bf16.msra.mxu0 %v998_v17 }
 0x190   :  { %888 = vmatprep.subr.bf16.mxu0 %v999_v18 }
 0x193   :  { %889 = vmatpush3.bf16.msra.mxu0 %v1000_v19 }
 0x194   :  { %890 = vmatprep.subr.bf16.mxu0 %v1001_v20 }
 0x197   :  { %891 = vmatpush3.bf16.msra.mxu0 %v1002_v21 }
 0x24d   :  { %v401_v62 = vpop.f32.mrb[0].mxu0 }
 0x24e   :  { %v402_v63 = vadd.f32 %v815_v61, %v401_v62  ;;  %v924_v0 = vpop.f32.mrb[1].mxu0 }
 0x24f   :  { %v404_v2 = vpop.f32.mrb[2].mxu0 }
 0x250   :  { %v415_v3 = vsub.f32 0.0, %v402_v63  ;;  %v405_v4 = vadd.f32 %v815_v61, %v404_v2  ;;  %v925_v5 = vpop.f32.mrb[3].mxu0  ;;  %vm408_vm2 = vcmp.ge.f32.partialorder %v402_v63, 0.0 }
 0x252   :  { %v417_v6 = vmul.f32 1.442695, %v415_v3  ;;  %vm409_vm3 = vcmp.ge.f32.partialorder %v405_v4, 0.0  ;;  %v416_v7 = vsub.f32 0.0, %v405_v4 }
 0x253   :  { %vm842_vm4 = vmpackc.low %vm409_vm3, %vm408_vm2 }
 0x254   :  { %1003 = vpow2.f32 %v417_v6  ;;  %v419_v8 = vmul.f32 1.442695, %v416_v7  ;;  %843 = vmatmul.mubr.msk.bf16.vlgmr.msra.gmra.mrb[8].mxu1 %vm842_vm4, %v1262_v9 }
 0x256   :  { %1005 = vpow2.f32 %v419_v8 }
 0x25e   :  { %v1004_v10 = vpop.eup %1003 }
 0x25f   :  { %v421_v11 = vadd.f32 1.0, %v1004_v10 }
 0x260   :  { %v1006_v12 = vpop.eup %1005 }
 0x261   :  { %1007 = vrcp.f32 %v421_v11  ;;  %v422_v13 = vadd.f32 1.0, %v1006_v12 }
 0x263   :  { %1009 = vrcp.f32 %v422_v13 }
 0x26b   :  { %v1008_v14 = vpop.eup %1007 }
 0x26c   :  { %427 = vst [vmem:[#allocation17] sm:$0xff] %v1008_v14 }
 0x26d   :  { %v1010_v15 = vpop.eup %1009 }
 0x26e   :  { %428 = vst [vmem:[#allocation17 + $0x8] sm:$0xff] %v1010_v15 }
 0x327   :  { %v571_v31 = vpop.f32.mrb[8].mxu1 }
 0x328   :  { %v572_v36 = vadd.f32 %v571_v31, %v450_v27  ;;  %v573_v37 = vpop.f32.mrb[9].mxu1 }
 0x329   :  { %v574_v40 = vadd.f32 %v573_v37, %v454_v28  ;;  %v575_v42 = vpop.f32.mrb[10].mxu1 }
 0x32a   :  { %vm580_vm5 = vcmp.lt.f32.partialorder %v572_v36, 0.5  ;;  %v576_v34 = vadd.f32 %v575_v42, %v450_v27  ;;  %v577_v44 = vpop.f32.mrb[11].mxu1 }
 0x32b   :  { %v844_v33 = vsel %vm580_vm5, 1.0, %v1260_v1  ;;  %vm581_vm6 = vcmp.lt.f32.partialorder %v574_v40, 0.5  ;;  %v578_v38 = vadd.f32 %v577_v44, %v454_v28 }
 0x32c   :  { %v592_v46 = vmul.f32 %v844_v33, %v290_v43  ;;  %v845_v47 = vsel %vm581_vm6, 1.0, %v1260_v1  ;;  %vm582_vm7 = vcmp.lt.f32.partialorder %v576_v34, 0.5 }
 0x32d   :  { %v593_v48 = vmul.f32 %v845_v47, %v291_v32  ;;  %v846_v49 = vsel %vm582_vm7, 1.0, %v1260_v1  ;;  %vm583_vm8 = vcmp.lt.f32.partialorder %v578_v38, 0.5 }
 0x32e   :  { %v594_v50 = vmul.f32 %v846_v49, %v293_v45  ;;  %v847_v51 = vsel %vm583_vm8, 1.0, %v1260_v1 }
 0x32f   :  { %v595_v52 = vmul.f32 %v847_v51, %v294_v41 }
 0x330   :  { %v596_v53 = vpack.c.bf16 %v594_v50, %v592_v46 }
 0x331   :  { %v597_v54 = vpack.c.bf16 %v595_v52, %v593_v48 }
 0x333   :  { %758 = vmatprep.mubr.bf16.mxu0 %v597_v54 }
 0x334   :  { %759 = vmatmul.mubr.bf16.vlgmr.msra.gmra.mrb[4].mxu0 %v596_v53 }
 0x335   :  { %1198 = shalt.err (!%p1195_p12)
}
 0x336   :  { %s1199_s27 = scalar_lea.hbm %s1506_s9, 256 }
 0x337   :  { %p1200_p13 = scmp.ne.s32.totalorder %s1506_s9, %s1199_s27  ;;  %p1203_p0 = scmp.lt.u32.totalorder %s1199_s27, %s1506_s9 }
 0x339   :  { %p1205_p1 = pnand %p1203_p0, %p1200_p13 }
 0x33b   :  { %1208 = shalt.err (!%p1205_p1)
}
 0x33c   :  { %792 = dma.vmem_to_hbm [thread:$0]  %s787_s10, 256, %s1506_s9, [#allocation18], %s1252_s3, %s1252_s3, %s1253_s24  }
 0x33d   :  { %s1264_s1 = smov [#allocation16]  }
 0x33e   :  { %s774_s4 = sshll.u32 %s1264_s1, 4  ;;  %s775_s4 = int_to_ptr.vmem [resolvable:$true] %s774_s4 }
 0x33f   :  { %s1209_s15 = scalar_lea.vmem %s775_s4, 256  ;;  %p1214_p3 = scmp.lt.s32.totalorder %s775_s4, %s775_s4 }
 0x340   :  { %p1210_p2 = scmp.ne.s32.totalorder %s775_s4, %s1209_s15  ;;  %p1215_p4 = scmp.lt.s32.totalorder %s1209_s15, %s1209_s15 }
 0x342   :  { %p1216_p5 = por %p1215_p4, %p1214_p3 }
 0x344   :  { %p1217_p6 = pnand %p1216_p5, %p1210_p2 }
 0x407   :  { %v892_v1 = vpop.f32.mrb[4].mxu0 }
 0x408   :  { %v893_v55 = vpop.f32.mrb[5].mxu0 }
 0x409   :  { %v894_v56 = vadd.f32 %v893_v55, %v892_v1  ;;  %v895_v57 = vpop.f32.mrb[6].mxu0 }
 0x40a   :  { %v896_v58 = vpop.f32.mrb[7].mxu0 }
 0x40b   :  { %767 = vst [vmem:[#allocation16] sm:$0xff] %v894_v56  ;;  %v897_v59 = vadd.f32 %v896_v58, %v895_v57 }
 0x40d   :  { %768 = vst [vmem:[#allocation16 + $0x8] sm:$0xff] %v897_v59 }
 0x40e   :  { %1220 = shalt.err (!%p1217_p6)
}
 0x40f   :  { %s1221_s18 = scalar_lea.hbm %s1505_s8, 256 }
 0x410   :  { %p1222_p7 = scmp.ne.s32.totalorder %s1505_s8, %s1221_s18  ;;  %p1225_p8 = scmp.lt.u32.totalorder %s1221_s18, %s1505_s8 }
 0x412   :  { %p1227_p9 = pnand %p1225_p8, %p1222_p7 }
 0x414   :  { %1230 = shalt.err (!%p1227_p9)
}
 0x415   :  { %780 = dma.vmem_to_hbm [thread:$0]  %s775_s4, 256, %s1505_s8, [#allocation4], %s1252_s3, %s1252_s3, %s1253_s24  }
 0x416   :  { %1241 = dma.done.wait [#allocation4], 256  }
 0x417   :  { %1242 = vsyncadd [#allocation4], 4294967040 }
 0x418   :  { %1243 = dma.done.wait [#allocation18], 256  }
 0x419   :  { %1244 = vsyncadd [#allocation18], 4294967040 }
 0x41a   :  { %799 = vsyncpa [#allocation3], 1 }
 0x41b   :  { %800 = vsyncpa [#allocation6], 1 }
 0x41c   :  { %801 = vsyncpa [#allocation9], 1 }
 0x41d   :  { %802 = vsyncpa [#allocation12], 1 }
 0x41e   :  { %803 = vsyncpa [#allocation15], 1 }
 0x41f   :  { %804 = vsyncpa [#allocation4], 1 }
 0x420   :  { %805 = vsyncpa [#allocation18], 1 }

</bundles_post_ra>
